<compile_context>
chip_gen: v5e
topology: v5e:2x2
jax: 0.10.0
libtpu: 0.0.40
codegen_flags: <defaults>
</compile_context>

<pallas_src>
import numpy as np
import jax
import jax.numpy as jnp
from jax import lax
from jax.experimental import pallas as pl
from jax.experimental.pallas import tpu as pltpu


# ----------------------------------------------------------------------------
# Kernel 1: hyper-MLP -> filter coefficients (runs once per parameter set)
# ----------------------------------------------------------------------------
def coeff_kernel(tv_ref, bias_ref, w1_ref, b1_ref, w2_ref, b2_ref,
                 w3_ref, b3_ref, w4_ref, b4_ref, coef_ref, acc_ref):
    k = pl.program_id(0)

    @pl.when(k == 0)
    def _():
        acc_ref[...] = jnp.zeros_like(acc_ref)

    # K-tiled first layer: accumulate (1, tk) @ (tk, 512) into VMEM scratch.
    x = tv_ref[...] + bias_ref[...]                                   # (1, tk)
    acc_ref[...] += jnp.dot(x, w1_ref[...],
                            preferred_element_type=jnp.float32)       # (1, 512)

    @pl.when(k == pl.num_programs(0) - 1)
    def _():
        h = jnp.sin(acc_ref[...] + b1_ref[...])                                   # (1, 512)
        h = jnp.sin(jnp.dot(h, w2_ref[...],
                            preferred_element_type=jnp.float32) + b2_ref[...])    # (1, 256)
        h = jnp.sin(jnp.dot(h, w3_ref[...],
                            preferred_element_type=jnp.float32) + b3_ref[...])    # (1, 128)
        h = jnp.tanh(jnp.dot(h, w4_ref[...],
                             preferred_element_type=jnp.float32) + b4_ref[...])   # (1, 128), first 3 valid

        R = h[:, 0:1]
        fc = 9990.0 * h[:, 1:2] + 10010.0          # Denormalize(val_min=20, val_max=20000)
        a = h[:, 2:3]
        c = R * R
        d = -2.0 * R * jnp.cos(2.0 * np.pi * fc / 192000.0)

        den = 1.0 + a * a * c + a * d
        inv_den = 1.0 / den                        # reciprocal hoisted out of the per-sample path
        g_in = c + a * a + a * d

        # derived per-step scalars: [c, g_in, inv_den, k1, k2, k3, k4, a]
        coef_ref[:, 0:1] = c
        coef_ref[:, 1:2] = g_in
        coef_ref[:, 2:3] = inv_den
        coef_ref[:, 3:4] = 2.0 * a + d + a * c
        coef_ref[:, 4:5] = -(2.0 * a * c + d + a)
        coef_ref[:, 5:6] = -(a * a * a)
        coef_ref[:, 6:7] = 1.0 - a * a
        coef_ref[:, 7:8] = a


def compute_coeffs(params, *, tk=256):
    """Run the hyper-MLP once; returns an (8,) f32 coefficient vector."""
    tv, bias, w1, b1, w2, b2, w3, b3, w4p, b4p = params
    K = tv.shape[1]
    assert K % tk == 0
    nk = K // tk

    coef = pl.pallas_call(
        coeff_kernel,
        out_shape=jax.ShapeDtypeStruct((1, 8), jnp.float32),
        grid=(nk,),
        in_specs=[
            pl.BlockSpec((1, tk), lambda k: (0, k)),                 # tv      (K-tiled)
            pl.BlockSpec((1, tk), lambda k: (0, k)),                 # bias    (K-tiled)
            pl.BlockSpec((tk, w1.shape[1]), lambda k: (k, 0)),       # w1      (K-tiled)
            pl.BlockSpec((1, b1.shape[1]), lambda k: (0, 0)),        # b1      (resident)
            pl.BlockSpec(w2.shape, lambda k: (0, 0)),                # w2      (resident)
            pl.BlockSpec(b2.shape, lambda k: (0, 0)),                # b2
            pl.BlockSpec(w3.shape, lambda k: (0, 0)),                # w3
            pl.BlockSpec(b3.shape, lambda k: (0, 0)),                # b3
            pl.BlockSpec(w4p.shape, lambda k: (0, 0)),               # w4 (padded 128->128)
            pl.BlockSpec(b4p.shape, lambda k: (0, 0)),               # b4 (padded)
        ],
        out_specs=pl.BlockSpec((1, 8), lambda k: (0, 0)),
        scratch_shapes=[pltpu.VMEM((1, w1.shape[1]), jnp.float32)],
        compiler_params=pltpu.CompilerParams(
            dimension_semantics=("arbitrary",)),                     # K is a reduction axis
    )(tv, bias, w1, b1, w2, b2, w3, b3, w4p, b4p)
    return coef.reshape(8)


# ----------------------------------------------------------------------------
# Kernel 2: pure-VPU all-pass state update, time loop fused, lane-dense batch
# ----------------------------------------------------------------------------
def allpass_seq_kernel(coef_ref, v0_ref, x_ref, y_ref, vstate_ref):
    # coef_ref : SMEM (8,)  = [c, g_in, inv_den, k1, k2, k3, k4, a]
    # v0_ref   : VMEM (10, B)   initial state (lane-dense: batch on lanes)
    # x_ref    : VMEM (Tc, B)   this time-chunk of the input signal
    # y_ref    : VMEM (Tc, B)   output signal chunk
    # vstate_ref: VMEM (10, B)  final-state output; doubles as the resident
    #                           state accumulator across time-chunk grid steps
    c = coef_ref[0]
    g_in = coef_ref[1]
    inv_den = coef_ref[2]
    k1 = coef_ref[3]
    k2 = coef_ref[4]
    k3 = coef_ref[5]
    k4 = coef_ref[6]
    a = coef_ref[7]

    @pl.when(pl.program_id(0) == 0)
    def _():
        vstate_ref[...] = v0_ref[...]

    chunk = x_ref.shape[0]

    def body(t, carry):
        x = x_ref[pl.ds(t, 1), :]                 # (1, B) lane-dense row
        s = vstate_ref[...]                       # (10, B) current state
        v3 = s[3:4, :]
        v7 = s[7:8, :]

        out = (x * g_in + v3) * inv_den           # no divide: inv_den precomputed
        tmp = x - c * out
        v8 = x * k1 + out * k2 + k3 * tmp + k4 * v7
        v9 = k4 * tmp - a * v7

        y_ref[pl.ds(t, 1), :] = out

        # state permutation from the torch module:
        # new = [old8, old0, old1, old2, old9, old4, old5, old6, v8, v9]
        vstate_ref[0:1, :] = s[8:9, :]
        vstate_ref[1:2, :] = s[0:1, :]
        vstate_ref[2:3, :] = s[1:2, :]
        vstate_ref[3:4, :] = s[2:3, :]
        vstate_ref[4:5, :] = s[9:10, :]
        vstate_ref[5:6, :] = s[4:5, :]
        vstate_ref[6:7, :] = s[5:6, :]
        vstate_ref[7:8, :] = s[6:7, :]
        vstate_ref[8:9, :] = v8
        vstate_ref[9:10, :] = v9
        return carry

    lax.fori_loop(0, chunk, body, 0, unroll=True)


def allpass_sequence(coefs, x_seq, v0, *, t_chunk=None):
    """Run the all-pass recurrence over a whole sequence in one pallas_call.

    coefs: (8,) f32 from compute_coeffs (hoisted hyper-MLP).
    x_seq: (T, B) time-major signal, batch on the lane axis.
    v0   : (10, B) initial state (lane-dense).
    Returns (y (T, B), v_final (10, B)).
    """
    T, B = x_seq.shape
    if (t_chunk is None or t_chunk >= T or T % t_chunk != 0
            or t_chunk % 8 != 0):
        t_chunk = T
    nt = T // t_chunk

    y, v_final = pl.pallas_call(
        allpass_seq_kernel,
        out_shape=(jax.ShapeDtypeStruct((T, B), jnp.float32),
                   jax.ShapeDtypeStruct((10, B), jnp.float32)),
        grid=(nt,),
        in_specs=[
            pl.BlockSpec(memory_space=pltpu.MemorySpace.SMEM),        # coefs -> SMEM scalars
            pl.BlockSpec((10, B), lambda i: (0, 0)),                  # v0 (resident)
            pl.BlockSpec((t_chunk, B), lambda i: (i, 0)),             # x chunk (pipelined)
        ],
        out_specs=(pl.BlockSpec((t_chunk, B), lambda i: (i, 0)),      # y chunk
                   pl.BlockSpec((10, B), lambda i: (0, 0))),          # v_final (state accumulator)
        compiler_params=pltpu.CompilerParams(
            dimension_semantics=("arbitrary",)),                      # sequential recurrence
    )(coefs.astype(jnp.float32), v0.astype(jnp.float32),
      x_seq.astype(jnp.float32))
    return y, v_final


def allpass_step(coefs, inp, v):
    """Module-layout single step: inp (B,), v (B, 10) -> (out (B,), v_new (B, 10))."""
    B = inp.shape[0]
    x_seq = inp.reshape(1, B).astype(jnp.float32)
    v0 = jnp.transpose(v.astype(jnp.float32))            # (10, B) lane-dense
    y, v_final = allpass_sequence(coefs, x_seq, v0)
    return y.reshape(B), jnp.transpose(v_final)


def allpass_forward(params, inp, v):
    """Exact equivalent of AllPass2ndCell_SW.forward(input, v)."""
    coefs = compute_coeffs(params)      # hyper-MLP (hoistable: reuse `coefs` across a sequence)
    return allpass_step(coefs, inp, v)


# ----------------------------------------------------------------------------
# Parameter construction (matches the torch module's init)
# ----------------------------------------------------------------------------
def make_params(key):
    ks = jax.random.split(key, 9)
    tv = jnp.zeros((1, 1024), jnp.float32)                      # trainable_vector (zeros)
    bias = jax.random.uniform(ks[0], (1, 1024), jnp.float32)    # torch.rand(1024)

    def linear(kw, kb, fan_in, fan_out):
        lim = 1.0 / np.sqrt(fan_in)
        w = jax.random.uniform(kw, (fan_in, fan_out), jnp.float32, -lim, lim)
        b = jax.random.uniform(kb, (1, fan_out), jnp.float32, -lim, lim)
        return w, b

    w1, b1 = linear(ks[1], ks[2], 1024, 512)
    w2, b2 = linear(ks[3], ks[4], 512, 256)
    w3, b3 = linear(ks[5], ks[6], 256, 128)
    w4, b4 = linear(ks[7], ks[8], 128, 3)
    # pad the final 128->3 layer to 128->128 (zeros) to keep the last matmul
    # lane-friendly; the 125 dead lanes cost ~nothing and run once per param set.
    w4p = jnp.zeros((128, 128), jnp.float32).at[:, :3].set(w4)
    b4p = jnp.zeros((1, 128), jnp.float32).at[:, :3].set(b4)
    return (tv, bias, w1, b1, w2, b2, w3, b3, w4p, b4p)


# ----------------------------------------------------------------------------
# Pure-JAX reference (mirrors the torch module)
# ----------------------------------------------------------------------------
def reference_coeffs(params):
    tv, bias, w1, b1, w2, b2, w3, b3, w4p, b4p = params
    hp = lax.Precision.HIGHEST
    x = tv + bias
    h = jnp.sin(jnp.dot(x, w1, precision=hp) + b1)
    h = jnp.sin(jnp.dot(h, w2, precision=hp) + b2)
    h = jnp.sin(jnp.dot(h, w3, precision=hp) + b3)
    h = jnp.tanh(jnp.dot(h, w4p, precision=hp) + b4p)
    R, a = h[0, 0], h[0, 2]
    fc = 9990.0 * h[0, 1] + 10010.0
    c = R * R
    d = -2.0 * R * jnp.cos(2.0 * np.pi * fc / 192000.0)
    return c, d, a


def reference_step(c, d, a, inp, v):
    output = (inp * (c + a * a + a * d) + v[:, 3]) / (1.0 + a * a * c + a * d)
    t = inp - c * output
    v8 = (inp * (2 * a + d + a * c) + output * (-2 * a * c - d - a)
          + a * t * (-a * a) + (1.0 - a * a) * v[:, 7])
    v9 = t - a * (a * t + v[:, 7])
    vout = jnp.stack([v[:, 8], v[:, 0], v[:, 1], v[:, 2], v[:, 9],
                      v[:, 4], v[:, 5], v[:, 6], v8, v9], axis=-1)
    return output, vout


if __name__ == "__main__":
    key = jax.random.PRNGKey(0)
    kp, ki, kv, ks = jax.random.split(key, 4)
    params = make_params(kp)

    B = 8
    inp = jax.random.normal(ki, (B,), jnp.float32)
    v = jax.random.normal(kv, (B, 10), jnp.float32)   # random state for a non-trivial check

    # --- (1) single-call module forward (matches torch semantics) ---
    out, vnew = allpass_forward(params, inp, v)
    jax.block_until_ready((out, vnew))

    c_r, d_r, a_r = reference_coeffs(params)
    ref_out, ref_v = reference_step(c_r, d_r, a_r, inp, v)
    np.testing.assert_allclose(np.asarray(out), np.asarray(ref_out), rtol=1e-2, atol=1e-2)
    np.testing.assert_allclose(np.asarray(vnew), np.asarray(ref_v), rtol=1e-2, atol=1e-2)

    # --- (2) hoisted + fused sequence path: hyper-MLP runs ONCE, then a
    #         T-step recurrence in a single pallas_call (2 time-chunks). ---
    T = 16
    x_seq = jax.random.normal(ks, (T, B), jnp.float32)
    coefs = compute_coeffs(params)                     # hoisted hyper-MLP
    v0 = jnp.zeros((10, B), jnp.float32)               # init_states(), lane-dense layout
    y_seq, v_last = allpass_sequence(coefs, x_seq, v0, t_chunk=8)
    jax.block_until_ready((y_seq, v_last))

    vr = jnp.zeros((B, 10), jnp.float32)
    ys = []
    for t in range(T):
        yt, vr = reference_step(c_r, d_r, a_r, x_seq[t], vr)
        ys.append(yt)
    ref_y = jnp.stack(ys, axis=0)
    np.testing.assert_allclose(np.asarray(y_seq), np.asarray(ref_y), rtol=1e-2, atol=1e-2)
    np.testing.assert_allclose(np.asarray(v_last), np.asarray(jnp.transpose(vr)),
                               rtol=1e-2, atol=1e-2)

    print("KERNEL_OK")
</pallas_src>

<mosaic_0001>
module attributes {stable_mosaic.version = 11 : i64} {
  func.func @coeff_kernel(%arg0: i32, %arg1: memref<1x256xf32, #tpu.memory_space<vmem>>, %arg2: memref<1x256xf32, #tpu.memory_space<vmem>>, %arg3: memref<256x512xf32, #tpu.memory_space<vmem>>, %arg4: memref<1x512xf32, #tpu.memory_space<vmem>>, %arg5: memref<512x256xf32, #tpu.memory_space<vmem>>, %arg6: memref<1x256xf32, #tpu.memory_space<vmem>>, %arg7: memref<256x128xf32, #tpu.memory_space<vmem>>, %arg8: memref<1x128xf32, #tpu.memory_space<vmem>>, %arg9: memref<128x128xf32, #tpu.memory_space<vmem>>, %arg10: memref<1x128xf32, #tpu.memory_space<vmem>>, %arg11: memref<1x8xf32, #tpu.memory_space<vmem>>, %arg12: memref<1x512xf32, #tpu.memory_space<vmem>>) attributes {dimension_semantics = [#tpu.dimension_semantics<arbitrary>], iteration_bounds = array<i64: 4>, scalar_prefetch = 0 : i64, scratch_operands = 1 : i64, tpu.core_type = #tpu.core_type<tc>, window_params = [{transform_indices = @transform_0, window_bounds = array<i64: 1, 256>}, {transform_indices = @transform_1, window_bounds = array<i64: 1, 256>}, {transform_indices = @transform_2, window_bounds = array<i64: 256, 512>}, {pipeline_mode = #tpu.pipeline_mode<synchronous>, transform_indices = @transform_3, window_bounds = array<i64: 1, 512>}, {pipeline_mode = #tpu.pipeline_mode<synchronous>, transform_indices = @transform_4, window_bounds = array<i64: 512, 256>}, {pipeline_mode = #tpu.pipeline_mode<synchronous>, transform_indices = @transform_5, window_bounds = array<i64: 1, 256>}, {pipeline_mode = #tpu.pipeline_mode<synchronous>, transform_indices = @transform_6, window_bounds = array<i64: 256, 128>}, {pipeline_mode = #tpu.pipeline_mode<synchronous>, transform_indices = @transform_7, window_bounds = array<i64: 1, 128>}, {pipeline_mode = #tpu.pipeline_mode<synchronous>, transform_indices = @transform_8, window_bounds = array<i64: 128, 128>}, {pipeline_mode = #tpu.pipeline_mode<synchronous>, transform_indices = @transform_9, window_bounds = array<i64: 1, 128>}, {pipeline_mode = #tpu.pipeline_mode<synchronous>, transform_indices = @transform_10, window_bounds = array<i64: 1, 8>}]} {
    %c0_i32 = arith.constant 0 : i32
    %0 = arith.cmpi eq, %arg0, %c0_i32 : i32
    %1 = arith.extui %0 : i1 to i32
    %c0_i32_0 = arith.constant 0 : i32
    %2 = arith.cmpi ne, %1, %c0_i32_0 : i32
    scf.if %2 {
      %cst_11 = arith.constant 0.000000e+00 : f32
      %14 = vector.broadcast %cst_11 : f32 to vector<1x512xf32>
      %c0_12 = arith.constant 0 : index
      %c0_13 = arith.constant 0 : index
      %15 = vector.load %arg12[%c0_12, %c0_13] : memref<1x512xf32, #tpu.memory_space<vmem>>, vector<1x512xf32>
      tpu.vector_store %arg12[%c0_12, %c0_13], %14 {strides = array<i32>} : memref<1x512xf32, #tpu.memory_space<vmem>>, vector<1x512xf32>,
    } else {
    }
    %c0 = arith.constant 0 : index
    %c0_1 = arith.constant 0 : index
    %3 = vector.load %arg1[%c0, %c0_1] : memref<1x256xf32, #tpu.memory_space<vmem>>, vector<1x256xf32>
    %c0_2 = arith.constant 0 : index
    %c0_3 = arith.constant 0 : index
    %4 = vector.load %arg2[%c0_2, %c0_3] : memref<1x256xf32, #tpu.memory_space<vmem>>, vector<1x256xf32>
    %5 = arith.addf %3, %4 : vector<1x256xf32>
    %c0_4 = arith.constant 0 : index
    %c0_5 = arith.constant 0 : index
    %6 = vector.load %arg12[%c0_4, %c0_5] : memref<1x512xf32, #tpu.memory_space<vmem>>, vector<1x512xf32>
    %c0_6 = arith.constant 0 : index
    %c0_7 = arith.constant 0 : index
    %7 = vector.load %arg3[%c0_6, %c0_7] : memref<256x512xf32, #tpu.memory_space<vmem>>, vector<256x512xf32>
    %cst = arith.constant dense<0.000000e+00> : vector<1x512xf32>
    %8 = tpu.matmul %5, %7, %cst {dimension_numbers = #tpu.dot_dimension_numbers<[1], [0], [0], [1], [0, 0, 1, 1], [], []>} : vector<1x256xf32>, vector<256x512xf32>, vector<1x512xf32> -> vector<1x512xf32>
    %9 = arith.addf %6, %8 : vector<1x512xf32>
    %c0_8 = arith.constant 0 : index
    %c0_9 = arith.constant 0 : index
    %10 = vector.load %arg12[%c0_8, %c0_9] : memref<1x512xf32, #tpu.memory_space<vmem>>, vector<1x512xf32>
    tpu.vector_store %arg12[%c0_8, %c0_9], %9 {strides = array<i32>} : memref<1x512xf32, #tpu.memory_space<vmem>>, vector<1x512xf32>,
    %c3_i32 = arith.constant 3 : i32
    %11 = arith.cmpi eq, %arg0, %c3_i32 : i32
    %12 = arith.extui %11 : i1 to i32
    %c0_i32_10 = arith.constant 0 : i32
    %13 = arith.cmpi ne, %12, %c0_i32_10 : i32
    scf.if %13 {
      %c0_11 = arith.constant 0 : index
      %c0_12 = arith.constant 0 : index
      %14 = vector.load %arg12[%c0_11, %c0_12] : memref<1x512xf32, #tpu.memory_space<vmem>>, vector<1x512xf32>
      %c0_13 = arith.constant 0 : index
      %c0_14 = arith.constant 0 : index
      %15 = vector.load %arg4[%c0_13, %c0_14] : memref<1x512xf32, #tpu.memory_space<vmem>>, vector<1x512xf32>
      %16 = arith.addf %14, %15 : vector<1x512xf32>
      %17 = math.sin %16 : vector<1x512xf32>
      %c0_15 = arith.constant 0 : index
      %c0_16 = arith.constant 0 : index
      %18 = vector.load %arg5[%c0_15, %c0_16] : memref<512x256xf32, #tpu.memory_space<vmem>>, vector<512x256xf32>
      %cst_17 = arith.constant dense<0.000000e+00> : vector<1x256xf32>
      %19 = tpu.matmul %17, %18, %cst_17 {dimension_numbers = #tpu.dot_dimension_numbers<[1], [0], [0], [1], [0, 0, 1, 1], [], []>} : vector<1x512xf32>, vector<512x256xf32>, vector<1x256xf32> -> vector<1x256xf32>
      %c0_18 = arith.constant 0 : index
      %c0_19 = arith.constant 0 : index
      %20 = vector.load %arg6[%c0_18, %c0_19] : memref<1x256xf32, #tpu.memory_space<vmem>>, vector<1x256xf32>
      %21 = arith.addf %19, %20 : vector<1x256xf32>
      %22 = math.sin %21 : vector<1x256xf32>
      %c0_20 = arith.constant 0 : index
      %c0_21 = arith.constant 0 : index
      %23 = vector.load %arg7[%c0_20, %c0_21] : memref<256x128xf32, #tpu.memory_space<vmem>>, vector<256x128xf32>
      %cst_22 = arith.constant dense<0.000000e+00> : vector<1x128xf32>
      %24 = tpu.matmul %22, %23, %cst_22 {dimension_numbers = #tpu.dot_dimension_numbers<[1], [0], [0], [1], [0, 0, 1, 1], [], []>} : vector<1x256xf32>, vector<256x128xf32>, vector<1x128xf32> -> vector<1x128xf32>
      %c0_23 = arith.constant 0 : index
      %c0_24 = arith.constant 0 : index
      %25 = vector.load %arg8[%c0_23, %c0_24] : memref<1x128xf32, #tpu.memory_space<vmem>>, vector<1x128xf32>
      %26 = arith.addf %24, %25 : vector<1x128xf32>
      %27 = math.sin %26 : vector<1x128xf32>
      %c0_25 = arith.constant 0 : index
      %c0_26 = arith.constant 0 : index
      %28 = vector.load %arg9[%c0_25, %c0_26] : memref<128x128xf32, #tpu.memory_space<vmem>>, vector<128x128xf32>
      %cst_27 = arith.constant dense<0.000000e+00> : vector<1x128xf32>
      %29 = tpu.matmul %27, %28, %cst_27 {dimension_numbers = #tpu.dot_dimension_numbers<[1], [0], [0], [1], [0, 0, 1, 1], [], []>} : vector<1x128xf32>, vector<128x128xf32>, vector<1x128xf32> -> vector<1x128xf32>
      %c0_28 = arith.constant 0 : index
      %c0_29 = arith.constant 0 : index
      %30 = vector.load %arg10[%c0_28, %c0_29] : memref<1x128xf32, #tpu.memory_space<vmem>>, vector<1x128xf32>
      %31 = arith.addf %29, %30 : vector<1x128xf32>
      %32 = math.tanh %31 : vector<1x128xf32>
      %33 = vector.extract_strided_slice %32 {offsets = [0, 0], sizes = [1, 1], strides = [1, 1]} : vector<1x128xf32> to vector<1x1xf32>
      %34 = vector.extract_strided_slice %32 {offsets = [0, 1], sizes = [1, 1], strides = [1, 1]} : vector<1x128xf32> to vector<1x1xf32>
      %cst_30 = arith.constant 9.990000e+03 : f32
      %35 = vector.broadcast %cst_30 : f32 to vector<1x1xf32>
      %36 = arith.mulf %35, %34 : vector<1x1xf32>
      %cst_31 = arith.constant 1.001000e+04 : f32
      %37 = vector.broadcast %cst_31 : f32 to vector<1x1xf32>
      %38 = arith.addf %36, %37 : vector<1x1xf32>
      %39 = vector.extract_strided_slice %32 {offsets = [0, 2], sizes = [1, 1], strides = [1, 1]} : vector<1x128xf32> to vector<1x1xf32>
      %40 = arith.mulf %33, %33 : vector<1x1xf32>
      %cst_32 = arith.constant -2.000000e+00 : f32
      %41 = vector.broadcast %cst_32 : f32 to vector<1x1xf32>
      %42 = arith.mulf %41, %33 : vector<1x1xf32>
      %cst_33 = arith.constant 6.28318548 : f32
      %43 = vector.broadcast %cst_33 : f32 to vector<1x1xf32>
      %44 = arith.mulf %43, %38 : vector<1x1xf32>
      %cst_34 = arith.constant 1.920000e+05 : f32
      %45 = vector.broadcast %cst_34 : f32 to vector<1x1xf32>
      %46 = arith.divf %44, %45 : vector<1x1xf32>
      %47 = math.cos %46 : vector<1x1xf32>
      %48 = arith.mulf %42, %47 : vector<1x1xf32>
      %49 = arith.mulf %39, %39 : vector<1x1xf32>
      %50 = arith.mulf %49, %40 : vector<1x1xf32>
      %cst_35 = arith.constant 1.000000e+00 : f32
      %51 = vector.broadcast %cst_35 : f32 to vector<1x1xf32>
      %52 = arith.addf %51, %50 : vector<1x1xf32>
      %53 = arith.mulf %39, %48 : vector<1x1xf32>
      %54 = arith.addf %52, %53 : vector<1x1xf32>
      %cst_36 = arith.constant 1.000000e+00 : f32
      %55 = vector.broadcast %cst_36 : f32 to vector<1x1xf32>
      %56 = arith.divf %55, %54 : vector<1x1xf32>
      %57 = arith.mulf %39, %39 : vector<1x1xf32>
      %58 = arith.addf %40, %57 : vector<1x1xf32>
      %59 = arith.mulf %39, %48 : vector<1x1xf32>
      %60 = arith.addf %58, %59 : vector<1x1xf32>
      %c0_37 = arith.constant 0 : index
      %c0_38 = arith.constant 0 : index
      %61 = vector.load %arg11[%c0_37, %c0_38] : memref<1x8xf32, #tpu.memory_space<vmem>>, vector<1x1xf32>
      tpu.vector_store %arg11[%c0_37, %c0_38], %40 {strides = array<i32>} : memref<1x8xf32, #tpu.memory_space<vmem>>, vector<1x1xf32>,
      %c0_39 = arith.constant 0 : index
      %c1 = arith.constant 1 : index
      %62 = vector.load %arg11[%c0_39, %c1] : memref<1x8xf32, #tpu.memory_space<vmem>>, vector<1x1xf32>
      tpu.vector_store %arg11[%c0_39, %c1], %60 {strides = array<i32>} : memref<1x8xf32, #tpu.memory_space<vmem>>, vector<1x1xf32>,
      %c0_40 = arith.constant 0 : index
      %c2 = arith.constant 2 : index
      %63 = vector.load %arg11[%c0_40, %c2] : memref<1x8xf32, #tpu.memory_space<vmem>>, vector<1x1xf32>
      tpu.vector_store %arg11[%c0_40, %c2], %56 {strides = array<i32>} : memref<1x8xf32, #tpu.memory_space<vmem>>, vector<1x1xf32>,
      %cst_41 = arith.constant 2.000000e+00 : f32
      %64 = vector.broadcast %cst_41 : f32 to vector<1x1xf32>
      %65 = arith.mulf %64, %39 : vector<1x1xf32>
      %66 = arith.addf %65, %48 : vector<1x1xf32>
      %67 = arith.mulf %39, %40 : vector<1x1xf32>
      %68 = arith.addf %66, %67 : vector<1x1xf32>
      %c0_42 = arith.constant 0 : index
      %c3 = arith.constant 3 : index
      %69 = vector.load %arg11[%c0_42, %c3] : memref<1x8xf32, #tpu.memory_space<vmem>>, vector<1x1xf32>
      tpu.vector_store %arg11[%c0_42, %c3], %68 {strides = array<i32>} : memref<1x8xf32, #tpu.memory_space<vmem>>, vector<1x1xf32>,
      %cst_43 = arith.constant 2.000000e+00 : f32
      %70 = vector.broadcast %cst_43 : f32 to vector<1x1xf32>
      %71 = arith.mulf %70, %39 : vector<1x1xf32>
      %72 = arith.mulf %71, %40 : vector<1x1xf32>
      %73 = arith.addf %72, %48 : vector<1x1xf32>
      %74 = arith.addf %73, %39 : vector<1x1xf32>
      %cst_44 = arith.constant 0.000000e+00 : f32
      %75 = vector.broadcast %cst_44 : f32 to vector<1x1xf32>
      %76 = arith.subf %75, %74 : vector<1x1xf32>
      %c0_45 = arith.constant 0 : index
      %c4 = arith.constant 4 : index
      %77 = vector.load %arg11[%c0_45, %c4] : memref<1x8xf32, #tpu.memory_space<vmem>>, vector<1x1xf32>
      tpu.vector_store %arg11[%c0_45, %c4], %76 {strides = array<i32>} : memref<1x8xf32, #tpu.memory_space<vmem>>, vector<1x1xf32>,
      %78 = arith.mulf %39, %39 : vector<1x1xf32>
      %79 = arith.mulf %78, %39 : vector<1x1xf32>
      %cst_46 = arith.constant 0.000000e+00 : f32
      %80 = vector.broadcast %cst_46 : f32 to vector<1x1xf32>
      %81 = arith.subf %80, %79 : vector<1x1xf32>
      %c0_47 = arith.constant 0 : index
      %c5 = arith.constant 5 : index
      %82 = vector.load %arg11[%c0_47, %c5] : memref<1x8xf32, #tpu.memory_space<vmem>>, vector<1x1xf32>
      tpu.vector_store %arg11[%c0_47, %c5], %81 {strides = array<i32>} : memref<1x8xf32, #tpu.memory_space<vmem>>, vector<1x1xf32>,
      %83 = arith.mulf %39, %39 : vector<1x1xf32>
      %cst_48 = arith.constant 1.000000e+00 : f32
      %84 = vector.broadcast %cst_48 : f32 to vector<1x1xf32>
      %85 = arith.subf %84, %83 : vector<1x1xf32>
      %c0_49 = arith.constant 0 : index
      %c6 = arith.constant 6 : index
      %86 = vector.load %arg11[%c0_49, %c6] : memref<1x8xf32, #tpu.memory_space<vmem>>, vector<1x1xf32>
      tpu.vector_store %arg11[%c0_49, %c6], %85 {strides = array<i32>} : memref<1x8xf32, #tpu.memory_space<vmem>>, vector<1x1xf32>,
      %c0_50 = arith.constant 0 : index
      %c7 = arith.constant 7 : index
      %87 = vector.load %arg11[%c0_50, %c7] : memref<1x8xf32, #tpu.memory_space<vmem>>, vector<1x1xf32>
      tpu.vector_store %arg11[%c0_50, %c7], %39 {strides = array<i32>} : memref<1x8xf32, #tpu.memory_space<vmem>>, vector<1x1xf32>,
    } else {
    }
    return
  }
  func.func @transform_0(%arg0: i32) -> (i32, i32) {
    %c0_i32 = arith.constant 0 : i32
    %c0_i32_0 = arith.constant 0 : i32
    return %c0_i32, %arg0 : i32, i32
  }
  func.func @transform_1(%arg0: i32) -> (i32, i32) {
    %c0_i32 = arith.constant 0 : i32
    %c0_i32_0 = arith.constant 0 : i32
    return %c0_i32, %arg0 : i32, i32
  }
  func.func @transform_2(%arg0: i32) -> (i32, i32) {
    %c0_i32 = arith.constant 0 : i32
    %c0_i32_0 = arith.constant 0 : i32
    return %arg0, %c0_i32 : i32, i32
  }
  func.func @transform_3(%arg0: i32) -> (i32, i32) {
    %c0_i32 = arith.constant 0 : i32
    %c0_i32_0 = arith.constant 0 : i32
    %c0_i32_1 = arith.constant 0 : i32
    return %c0_i32, %c0_i32_0 : i32, i32
  }
  func.func @transform_4(%arg0: i32) -> (i32, i32) {
    %c0_i32 = arith.constant 0 : i32
    %c0_i32_0 = arith.constant 0 : i32
    %c0_i32_1 = arith.constant 0 : i32
    return %c0_i32, %c0_i32_0 : i32, i32
  }
  func.func @transform_5(%arg0: i32) -> (i32, i32) {
    %c0_i32 = arith.constant 0 : i32
    %c0_i32_0 = arith.constant 0 : i32
    %c0_i32_1 = arith.constant 0 : i32
    return %c0_i32, %c0_i32_0 : i32, i32
  }
  func.func @transform_6(%arg0: i32) -> (i32, i32) {
    %c0_i32 = arith.constant 0 : i32
    %c0_i32_0 = arith.constant 0 : i32
    %c0_i32_1 = arith.constant 0 : i32
    return %c0_i32, %c0_i32_0 : i32, i32
  }
  func.func @transform_7(%arg0: i32) -> (i32, i32) {
    %c0_i32 = arith.constant 0 : i32
    %c0_i32_0 = arith.constant 0 : i32
    %c0_i32_1 = arith.constant 0 : i32
    return %c0_i32, %c0_i32_0 : i32, i32
  }
  func.func @transform_8(%arg0: i32) -> (i32, i32) {
    %c0_i32 = arith.constant 0 : i32
    %c0_i32_0 = arith.constant 0 : i32
    %c0_i32_1 = arith.constant 0 : i32
    return %c0_i32, %c0_i32_0 : i32, i32
  }
  func.func @transform_9(%arg0: i32) -> (i32, i32) {
    %c0_i32 = arith.constant 0 : i32
    %c0_i32_0 = arith.constant 0 : i32
    %c0_i32_1 = arith.constant 0 : i32
    return %c0_i32, %c0_i32_0 : i32, i32
  }
  func.func @transform_10(%arg0: i32) -> (i32, i32) {
    %c0_i32 = arith.constant 0 : i32
    %c0_i32_0 = arith.constant 0 : i32
    %c0_i32_1 = arith.constant 0 : i32
    return %c0_i32, %c0_i32_0 : i32, i32
  }
}

</mosaic_0001>

<bundles_post_ra>
// kernel: tpu_custom_call.1
= control target key start
LH: loop header
LB: loop body
LE: loop exit
PB: predicated region body
PF: predicated region fallthrough
CT: control target
= control target key end

     0   :  { %s3874_s0 = inlined_call_operand.hbm [shape: f32[1,1024], index: 0, kind: input, shape index: {}]   ;;  %s3875_s1 = inlined_call_operand.hbm [shape: f32[1,1024], index: 1, kind: input, shape index: {}]   ;;  %s3876_s2 = inlined_call_operand.hbm [shape: f32[1024,512], index: 2, kind: input, shape index: {}]   ;;  %s3877_s3 = inlined_call_operand.hbm [shape: f32[1,512], index: 3, kind: input, shape index: {}]   ;;  %s3878_s4 = inlined_call_operand.hbm [shape: f32[512,256], index: 4, kind: input, shape index: {}]   ;;  %s3879_s5 = inlined_call_operand.hbm [shape: f32[1,256], index: 5, kind: input, shape index: {}]   ;;  %s3880_s6 = inlined_call_operand.hbm [shape: f32[256,128], index: 6, kind: input, shape index: {}]   ;;  %s3881_s7 = inlined_call_operand.hbm [shape: f32[1,128], index: 7, kind: input, shape index: {}]   ;;  %s3882_s8 = inlined_call_operand.hbm [shape: f32[128,128], index: 8, kind: input, shape index: {}]   ;;  %s3883_s9 = inlined_call_operand.hbm [shape: f32[1,128], index: 9, kind: input, shape index: {}]   ;;  %s3884_s10 = inlined_call_operand.hbm [shape: f32[1,8], index: 10, kind: output, shape index: {}]  }
   0x1   :  { %3890 = sst [smem:[#allocation31_spill]] %s3875_s1 }
   0x2   :  { %3891 = sst [smem:[#allocation32_spill]] %s3877_s3 }
   0x3   :  { %3892 = sst [smem:[#allocation33_spill]] %s3878_s4 }
   0x4   :  { %3893 = sst [smem:[#allocation34_spill]] %s3879_s5 }
   0x5   :  { %3894 = sst [smem:[#allocation35_spill]] %s3880_s6 }
   0x6   :  { %3895 = sst [smem:[#allocation36_spill]] %s3881_s7 }
   0x7   :  { %3896 = sst [smem:[#allocation37_spill]] %s3882_s8 }
   0x8   :  { %15 = vsyncpa [#allocation4], 0 }
   0x9   :  { %17 = vsyncpa [#allocation4 + $0x1], 0 }
   0xa   :  { %18 = vsyncpa [#allocation7], 0 }
   0xb   :  { %20 = vsyncpa [#allocation7 + $0x1], 0 }
   0xc   :  { %21 = vsyncpa [#allocation10], 0 }
   0xd   :  { %22 = vsyncpa [#allocation13], 0 }
   0xe   :  { %23 = vsyncpa [#allocation16], 0 }
   0xf   :  { %24 = vsyncpa [#allocation19], 0 }
  0x10   :  { %25 = vsyncpa [#allocation5], 0  ;;  %s3030_s13 = smov 0   ;;  %s3032_s14 = smov 0  }
  0x11   :  { %s3034_s15 = smov 0   ;;  %s3036_s16 = smov 0  }
  0x12 LB: > { %3897 = sst [smem:[#allocation28_spill]] %s2939_s15  ;;  %s3054_s20 = sadd.s32 4294967295, %s2943_s16   ;;  %s2943_s16 = sphi %s3036_s16, %s3921_s16   ;;  %s2939_s15 = sphi %s3034_s15, %s3923_s15   ;;  %s2935_s14 = sphi %s3032_s14, %s3925_s14   ;;  %s2931_s13 = sphi %s3030_s13, %s3924_s13  }
  0x13   : > { %s3898_s3 = sld [smem:[#allocation32_spill]]  ;;  %p2351_p0 = scmp.ge.s32.totalorder %s2943_s16, 1 }
  0x14   : > { %p52_p1 = scmp.eq.s32.totalorder %s3054_s20, 0  ;;  %p282_p2 = scmp.lt.s32.totalorder %s2943_s16, 5 }
  0x15   : > { %p2352_p3 = scmp.ne.s32.totalorder %s3054_s20, 0  ;;  %s2945_s22 = smov [#allocation9]  }
  0x16   : > { %p3060_p4 = pnand %p2351_p0, %p282_p2  ;;  %s296_s23 = sshll.u32 %s2945_s22, 4  ;;  %s297_s23 = int_to_ptr.vmem [resolvable:$true] %s296_s23 }
  0x17   : > { %s3900_s5 = sld [smem:[#allocation34_spill]]  ;;  %s2946_s28 = smov [#allocation12]  }
  0x18   : > { %p2440_p5 = pneg %p3060_p4  ;;  %s322_s29 = sshll.u32 %s2946_s28, 4  ;;  %s323_s29 = int_to_ptr.vmem [resolvable:$true] %s322_s29 }
  0x19   : > { %s294_s19 = sshll.u32 %s3898_s3, 4  ;;  %s3902_s7 = sld [smem:[#allocation36_spill]]  ;;  %s295_s19 = int_to_ptr.hbm [resolvable:$true] %s294_s19 }
  0x1a   : > { %p3071_p6 = pnand %p2440_p5, %p52_p1  ;;  %s2947_s17 = smov [#allocation15]  }
  0x1b   : > { %s348_s18 = sshll.u32 %s2947_s17, 4  ;;  %s3085_s22 = sadd.s32 1, %s2943_s16   ;;  %s349_s18 = int_to_ptr.vmem [resolvable:$true] %s348_s18 }
  0x1c   : > { %2443 = dma.hbm_to_vmem [thread:$0]  (!%p3071_p6), %s295_s19, 64, %s297_s23, [#allocation10]  }
  0x1d   : > { %s320_s26 = sshll.u32 %s3900_s5, 4  ;;  %3903 = sst [smem:[#allocation29_spill]] %s3085_s22  ;;  %s321_s26 = int_to_ptr.hbm [resolvable:$true] %s320_s26 }
  0x1e   : > { %2449 = dma.hbm_to_vmem [thread:$0]  (!%p3071_p6), %s321_s26, 32, %s323_s29, [#allocation13]  }
  0x1f   : > { %s346_s12 = sshll.u32 %s3902_s7, 4  ;;  %s35_s24 = ssub.s32 %s2943_s16, %s3085_s22  ;;  %s347_s12 = int_to_ptr.hbm [resolvable:$true] %s346_s12 }
  0x20   : > { %2455 = dma.hbm_to_vmem [thread:$0]  (!%p3071_p6), %s347_s12, 16, %s349_s18, [#allocation16]  }
  0x21   : > { %s38_s25 = sadd.s32 1, %s2939_s15  ;;  %p36_p7 = scmp.eq.s32.totalorder %s35_s24, 0 }
  0x22   : > { %p45_p8 = scmp.ne.s32.totalorder %s2939_s15, %s2935_s14  ;;  %p46_p9 = scmp.eq.s32.totalorder %s2943_s16, 0 }
  0x23   : > { %p51_p10 = scmp.ne.s32.totalorder %s2935_s14, %s2931_s13  ;;  %p2479_p13 = scmp.lt.s32.totalorder %s2943_s16, 4 }
  0x24   : > { %s3096_s19 = scalar_select %p36_p7, %s2939_s15, %s38_s25  }
  0x25   : > { %p47_p11 = por %p46_p9, %p45_p8  ;;  %p3100_p12 = por %p52_p1, %p51_p10 }
  0x26   : > { %3904 = sst [smem:[#allocation30_spill]] %s3096_s19  ;;  %s3106_s26 = sand.u32 1, %s2939_s15  }
  0x27   : > { %s3885_s28 = sshll.u32 %s3106_s26, 1  ;;  %s3886_s29 = sshll.u32 %s2943_s16, 1 }
  0x28   : > { %p3110_p0 = pnand %p2479_p13, %p47_p11  ;;  %s404_s13 = sand.u32 1, %s2943_s16  }
  0x29   : > { %s3907_s1 = sld [smem:[#allocation31_spill]]  ;;  %s408_s24 = scalar_lea.vmem [#allocation6], %s3885_s28 }
  0x2a   : > { %s416_s25 = sshll.u32 %s408_s24, 4  ;;  %s3122_s3 = scalar_lea.sflag [#allocation7], %s404_s13  ;;  %s417_s25 = int_to_ptr.vmem [resolvable:$true] %s416_s25 }
  0x2b   : > { %p2651_p5 = pneg %p3110_p0 }
  0x2f   : > { %s412_s17 = scalar_lea.hbm %s3907_s1, %s3886_s29 }
  0x30   : > { %s414_s18 = sshll.u32 %s412_s17, 4  ;;  %s2654_s17 = scalar_lea.hbm %s3907_s1, 8  ;;  %s415_s18 = int_to_ptr.hbm [resolvable:$true] %s414_s18 }
  0x31   : > { %s2647_s5 = sshra.s32 %s415_s18, 4  ;;  %s2648_s5 = int_to_ptr.hbm [resolvable:$true] %s2647_s5 }
  0x32   : > { %s2649_s7 = scalar_lea.hbm %s2648_s5, 2  ;;  %p2655_p9 = scmp.lt.s32.totalorder %s2648_s5, %s3907_s1 }
  0x33   : > { %p2650_p2 = scmp.ne.s32.totalorder %s2648_s5, %s2649_s7  ;;  %p2656_p10 = scmp.lt.s32.totalorder %s2654_s17, %s2649_s7 }
  0x35   : > { %p2652_p7 = pnand %p2651_p5, %p2650_p2  ;;  %p2657_p11 = por %p2656_p10, %p2655_p9 }
  0x37   : > { %p2653_p8 = pneg %p2652_p7 }
  0x39   : > { %p2658_p13 = pnand %p2657_p11, %p2653_p8 }
  0x3b   : > { %2661 = shalt.err (!%p2658_p13)
}
  0x3c   : > { %2468 = dma.hbm_to_vmem [thread:$0]  (!%p3110_p0), %s415_s18, 32, %s417_s25, %s3122_s3  }
  0x3d   : > { %s2364_s13 = sshll.u32 %s3106_s26, 10  ;;  %s3908_s4 = sld [smem:[#allocation33_spill]] }
  0x3e   : > { %s427_s12 = scalar_lea.vmem [#allocation8], %s2364_s13  ;;  %s2948_s5 = smov [#allocation11]  }
  0x3f   : > { %s436_s28 = sshll.u32 %s427_s12, 4  ;;  %s307_s7 = sshll.u32 %s2948_s5, 4  ;;  %s3142_s28 = int_to_ptr.vmem [resolvable:$true] %s436_s28  ;;  %s308_s7 = int_to_ptr.vmem [resolvable:$true] %s307_s7 }
  0x40   : > { %s3909_s6 = sld [smem:[#allocation35_spill]]  ;;  %s2949_s15 = smov 256  }
  0x41   : > { %s2950_s18 = smov 16   ;;  %s2951_s19 = smov [#allocation14]  }
  0x42   : > { %s333_s29 = sshll.u32 %s2951_s19, 4  ;;  %s2952_s25 = smov 128   ;;  %s334_s29 = int_to_ptr.vmem [resolvable:$true] %s333_s29 }
  0x43   : > { %s305_s11 = sshll.u32 %s3908_s4, 4  ;;  %s2953_s13 = smov 8   ;;  %s306_s11 = int_to_ptr.hbm [resolvable:$true] %s305_s11 }
  0x44   : > { %2446 = dma.hbm_to_vmem [thread:$0]  (!%p3071_p6), %s306_s11, 16384, %s308_s7, [#allocation10], %s2949_s15, %s2949_s15, %s2950_s18  }
  0x45   : > { %s3910_s8 = sld [smem:[#allocation37_spill]]  ;;  %s2954_s24 = smov [#allocation17]  }
  0x46   : > { %s331_s1 = sshll.u32 %s3909_s6, 4  ;;  %s359_s4 = sshll.u32 %s2954_s24, 4  ;;  %s332_s1 = int_to_ptr.hbm [resolvable:$true] %s331_s1  ;;  %s360_s4 = int_to_ptr.vmem [resolvable:$true] %s359_s4 }
  0x47   : > { %2452 = dma.hbm_to_vmem [thread:$0]  (!%p3071_p6), %s332_s1, 4096, %s334_s29, [#allocation13], %s2952_s25, %s2952_s25, %s2953_s13  }
  0x48   : > { %s372_s7 = sshll.u32 %s3883_s9, 4  ;;  %s2955_s18 = smov [#allocation18]   ;;  %s373_s7 = int_to_ptr.hbm [resolvable:$true] %s372_s7 }
  0x49   : > { %s374_s1 = sshll.u32 %s2955_s18, 4  ;;  %s3911_s19 = sshll.u32 %s2943_s16, 1  ;;  %s375_s1 = int_to_ptr.vmem [resolvable:$true] %s374_s1 }
  0x4a   : > { %2461 = dma.hbm_to_vmem [thread:$0]  (!%p3071_p6), %s373_s7, 16, %s375_s1, [#allocation19]  }
  0x4b   : > { %s357_s17 = sshll.u32 %s3910_s8, 4  ;;  %s393_s5 = scalar_lea.hbm %s3874_s0, %s3911_s19  ;;  %s358_s17 = int_to_ptr.hbm [resolvable:$true] %s357_s17 }
  0x4c   : > { %2458 = dma.hbm_to_vmem [thread:$0]  (!%p3071_p6), %s358_s17, 2048, %s360_s4, [#allocation16], %s2952_s25, %s2952_s25, %s2953_s13  }
  0x4d   : > { %s3912_s24 = sshll.u32 %s3106_s26, 1  ;;  %s395_s22 = sshll.u32 %s393_s5, 4  ;;  %s396_s22 = int_to_ptr.hbm [resolvable:$true] %s395_s22 }
  0x4e   : > { %s389_s6 = scalar_lea.vmem [#allocation3], %s3912_s24  ;;  %s2401_s15 = sshll.u32 %s2943_s16, 10 }
  0x4f   : > { %s397_s8 = sshll.u32 %s389_s6, 4  ;;  %s386_s4 = scalar_lea.sflag [#allocation4], %s3106_s26  ;;  %s398_s8 = int_to_ptr.vmem [resolvable:$true] %s397_s8 }
  0x50   : > { %s2797_s25 = sshra.s32 %s396_s22, 4  ;;  %s2804_s11 = scalar_lea.hbm %s3874_s0, 8  ;;  %s2798_s25 = int_to_ptr.hbm [resolvable:$true] %s2797_s25 }
  0x51   : > { %s2799_s13 = scalar_lea.hbm %s2798_s25, 2  ;;  %p2805_p8 = scmp.lt.s32.totalorder %s2798_s25, %s3874_s0 }
  0x52   : > { %p2800_p2 = scmp.ne.s32.totalorder %s2798_s25, %s2799_s13  ;;  %p2806_p9 = scmp.lt.s32.totalorder %s2804_s11, %s2799_s13 }
  0x54   : > { %p2802_p6 = pnand %p2800_p2, %p2651_p5  ;;  %p2807_p10 = por %p2806_p9, %p2805_p8 }
  0x56   : > { %p2803_p7 = pneg %p2802_p6 }
  0x58   : > { %p2808_p11 = pnand %p2807_p10, %p2803_p7 }
  0x5a   : > { %2811 = shalt.err (!%p2808_p11)
}
  0x5b   : > { %2465 = dma.hbm_to_vmem [thread:$0]  (!%p3110_p0), %s396_s22, 32, %s398_s8, %s386_s4  }
  0x5c   : > { %s433_s26 = scalar_lea.hbm %s3876_s2, %s2401_s15  ;;  %s2834_s24 = scalar_lea.hbm %s3876_s2, 4096 }
  0x5d   : > { %s434_s1 = sshll.u32 %s433_s26, 4  ;;  %s435_s1 = int_to_ptr.hbm [resolvable:$true] %s434_s1 }
  0x5e   : > { %s2827_s19 = sshra.s32 %s435_s1, 4  ;;  %s2828_s19 = int_to_ptr.hbm [resolvable:$true] %s2827_s19 }
  0x5f   : > { %s2829_s29 = scalar_lea.hbm %s2828_s19, 1024  ;;  %p2835_p7 = scmp.lt.s32.totalorder %s2828_s19, %s3876_s2 }
  0x60   : > { %p2830_p13 = scmp.ne.s32.totalorder %s2828_s19, %s2829_s29  ;;  %p2836_p8 = scmp.lt.s32.totalorder %s2834_s24, %s2829_s29 }
  0x62   : > { %p2832_p2 = pnand %p2830_p13, %p2651_p5  ;;  %p2837_p9 = por %p2836_p8, %p2835_p7 }
  0x64   : > { %p2833_p6 = pneg %p2832_p2 }
  0x66   : > { %p2838_p10 = pnand %p2837_p9, %p2833_p6 }
  0x68   : > { %2841 = shalt.err (!%p2838_p10)
}
  0x69   : > { %s2956_s22 = smov 512   ;;  %s2957_s15 = smov 32  }
  0x6a   : > { %2471 = dma.hbm_to_vmem [thread:$0]  (!%p3110_p0), %s435_s1, 16384, %s3142_s28, %s3122_s3, %s2956_s22, %s2956_s22, %s2957_s15  }
  0x6b   : > { %448 = sbr.rel (%p3060_p4) target bundleno = 1628 (0x65c), region = 60  ;;  %s450_s4 = sand.u32 (!%p3060_p4), 1, %s2935_s14  }
  0x6c   : > { %s2369_s13 = sshll.u32 (!%p3060_p4), %s450_s4, 1  ;;  %s451_s27 = scalar_lea.sflag (!%p3060_p4), [#allocation4], %s450_s4 }
  0x6d   : > { %s3200_s17 = scalar_lea.vmem (!%p3060_p4), [#allocation3], %s2369_s13 }
  0x70   : > { %2902 = dma.done.wait (%p3100_p12), %s451_s27, 32  }
  0x71   : > { %2904 = vsyncadd (%p3100_p12), %s451_s27, 4294967264  ;;  %s460_s11 = sand.u32 1, %s3054_s20   ;;  %s3207_s3 = scalar_lea.vmem [#allocation6], %s2369_s13 }
  0x72   : > { %s461_s30 = scalar_lea.sflag [#allocation7], %s460_s11 }
  0x73   : > { %2906 = dma.done.wait (%p3100_p12), %s461_s30, 16416  }
  0x74   : > { %2908 = vsyncadd (%p3100_p12), %s461_s30, 4294950880  ;;  %s2371_s21 = sshll.u32 %s450_s4, 10 }
  0x75   : > { %s3213_s28 = scalar_lea.vmem [#allocation8], %s2371_s21 }
  0x76   : > { %2910 = dma.done.wait (%p52_p1), [#allocation10], 16448  }
  0x77   : > { %2912 = vsyncadd (%p52_p1), [#allocation10], 4294950848 }
  0x78   : > { %2914 = dma.done.wait (%p52_p1), [#allocation13], 4128  }
  0x79   : > { %2916 = vsyncadd (%p52_p1), [#allocation13], 4294963168 }
  0x7a   : > { %2918 = dma.done.wait (%p52_p1), [#allocation16], 2064  }
  0x7b   : > { %2920 = vsyncadd (%p52_p1), [#allocation16], 4294965232 }
  0x7c   : > { %2922 = dma.done.wait (%p52_p1), [#allocation19], 16  }
  0x7d   : > { %2924 = vsyncadd (%p52_p1), [#allocation19], 4294967280  ;;  %558 = sbr.rel (%p2352_p3) target bundleno = 134 (0x86), region = 104 }
  0x82   : > { %v559_v0 = vlaneseq  ;;  %v2958_v1 = vmov 0.0  }
  0x84   : > { %vm561_vm0 = vcmp.lt.s32.totalorder %v559_v0, 512 }
  0x85   : > { %563 = vst.msk [vmem:[#allocation2] sm:$0xf] %vm561_vm0, %v2958_v1 }
  0x86 PF: > { %v629_v2 = vld [vmem:[%s3213_s28 + $0x1e8] sm:$0xff]  ;;  %v628_v8 = vld [vmem:[%s3213_s28 + $0x1e0] sm:$0xff]  ;;  %v631_v62 = vld [vmem:[%s3213_s28 + $0x1f8] sm:$0xff]  ;;  %vm868_vm1 = vcmask 1040384   ;;  %vm870_vm2 = vcmask 1042434   ;;  %vm872_vm3 = vcmask 1041408  }
  0x87   : > { %v693_v3 = vld [vmem:[%s3213_s28 + $0x3e8] sm:$0xff]  ;;  %741 = vmatpush.msra.mxu2 %v629_v2  ;;  %v692_v9 = vld [vmem:[%s3213_s28 + $0x3e0] sm:$0xff]  ;;  %701 = vmatpush.msra.mxu0 %v628_v8  ;;  %v695_v63 = vld [vmem:[%s3213_s28 + $0x3f8] sm:$0xff]  ;;  %p2380_p1 = scmp.ne.s32.totalorder %s3054_s20, 3 }
  0x88   : > { %v625_v4 = vld [vmem:[%s3213_s28 + $0x1c8] sm:$0xff]  ;;  %761 = vmatpush.msra.mxu3 %v693_v3  ;;  %v624_v10 = vld [vmem:[%s3213_s28 + $0x1c0] sm:$0xff]  ;;  %721 = vmatpush.msra.mxu1 %v692_v9  ;;  %v627_v2 = vld [vmem:[%s3213_s28 + $0x1d8] sm:$0xff]  ;;  %s2967_s23 = smov (!%p2380_p1), 2   ;;  %s2968_s7 = smov (!%p2380_p1), 126  }
  0x89   : > { %v689_v5 = vld [vmem:[%s3213_s28 + $0x3c8] sm:$0xff]  ;;  %742 = vmatpush.msra.mxu2 %v625_v4  ;;  %v688_v11 = vld [vmem:[%s3213_s28 + $0x3c0] sm:$0xff]  ;;  %702 = vmatpush.msra.mxu0 %v624_v10  ;;  %v691_v3 = vld [vmem:[%s3213_s28 + $0x3d8] sm:$0xff]  ;;  %s2969_s18 = smov (!%p2380_p1), 127   ;;  %s2970_s6 = smov (!%p2380_p1), 1  }
  0x8a   : > { %v621_v6 = vld [vmem:[%s3213_s28 + $0x1a8] sm:$0xff]  ;;  %762 = vmatpush.msra.mxu3 %v689_v5  ;;  %v620_v14 = vld [vmem:[%s3213_s28 + $0x1a0] sm:$0xff]  ;;  %722 = vmatpush.msra.mxu1 %v688_v11  ;;  %v630_v8 = vld [vmem:[%s3213_s28 + $0x1f0] sm:$0xff]  ;;  %s2971_s16 = smov (!%p2380_p1), 4   ;;  %s2972_s26 = smov (!%p2380_p1), 5  }
  0x8b   : > { %v685_v7 = vld [vmem:[%s3213_s28 + $0x3a8] sm:$0xff]  ;;  %743 = vmatpush.msra.mxu2 %v621_v6  ;;  %v684_v15 = vld [vmem:[%s3213_s28 + $0x3a0] sm:$0xff]  ;;  %703 = vmatpush.msra.mxu0 %v620_v14  ;;  %v623_v6 = vld [vmem:[%s3213_s28 + $0x1b8] sm:$0xff]  ;;  %s2973_s1 = smov (!%p2380_p1), 3  }
  0x8c   : > { %v617_v12 = vld [vmem:[%s3213_s28 + $0x188] sm:$0xff]  ;;  %763 = vmatpush.msra.mxu3 %v685_v7  ;;  %v616_v18 = vld [vmem:[%s3213_s28 + $0x180] sm:$0xff]  ;;  %723 = vmatpush.msra.mxu1 %v684_v15  ;;  %v687_v7 = vld [vmem:[%s3213_s28 + $0x3b8] sm:$0xff] }
  0x8d   : > { %v681_v13 = vld [vmem:[%s3213_s28 + $0x388] sm:$0xff]  ;;  %744 = vmatpush.msra.mxu2 %v617_v12  ;;  %v680_v19 = vld [vmem:[%s3213_s28 + $0x380] sm:$0xff]  ;;  %704 = vmatpush.msra.mxu0 %v616_v18  ;;  %v694_v9 = vld [vmem:[%s3213_s28 + $0x3f0] sm:$0xff] }
  0x8e   : > { %v613_v16 = vld [vmem:[%s3213_s28 + $0x168] sm:$0xff]  ;;  %764 = vmatpush.msra.mxu3 %v681_v13  ;;  %v612_v22 = vld [vmem:[%s3213_s28 + $0x160] sm:$0xff]  ;;  %724 = vmatpush.msra.mxu1 %v680_v19  ;;  %v619_v10 = vld [vmem:[%s3213_s28 + $0x198] sm:$0xff] }
  0x8f   : > { %v677_v17 = vld [vmem:[%s3213_s28 + $0x368] sm:$0xff]  ;;  %745 = vmatpush.msra.mxu2 %v613_v16  ;;  %v676_v23 = vld [vmem:[%s3213_s28 + $0x360] sm:$0xff]  ;;  %705 = vmatpush.msra.mxu0 %v612_v22  ;;  %v683_v11 = vld [vmem:[%s3213_s28 + $0x398] sm:$0xff] }
  0x90   : > { %v609_v20 = vld [vmem:[%s3213_s28 + $0x148] sm:$0xff]  ;;  %765 = vmatpush.msra.mxu3 %v677_v17  ;;  %v608_v26 = vld [vmem:[%s3213_s28 + $0x140] sm:$0xff]  ;;  %725 = vmatpush.msra.mxu1 %v676_v23  ;;  %v626_v12 = vld [vmem:[%s3213_s28 + $0x1d0] sm:$0xff] }
  0x91   : > { %v673_v21 = vld [vmem:[%s3213_s28 + $0x348] sm:$0xff]  ;;  %746 = vmatpush.msra.mxu2 %v609_v20  ;;  %v672_v27 = vld [vmem:[%s3213_s28 + $0x340] sm:$0xff]  ;;  %706 = vmatpush.msra.mxu0 %v608_v26  ;;  %v690_v13 = vld [vmem:[%s3213_s28 + $0x3d0] sm:$0xff] }
  0x92   : > { %v605_v24 = vld [vmem:[%s3213_s28 + $0x128] sm:$0xff]  ;;  %766 = vmatpush.msra.mxu3 %v673_v21  ;;  %v604_v30 = vld [vmem:[%s3213_s28 + $0x120] sm:$0xff]  ;;  %726 = vmatpush.msra.mxu1 %v672_v27  ;;  %v615_v14 = vld [vmem:[%s3213_s28 + $0x178] sm:$0xff] }
  0x93   : > { %v669_v25 = vld [vmem:[%s3213_s28 + $0x328] sm:$0xff]  ;;  %747 = vmatpush.msra.mxu2 %v605_v24  ;;  %v668_v31 = vld [vmem:[%s3213_s28 + $0x320] sm:$0xff]  ;;  %707 = vmatpush.msra.mxu0 %v604_v30  ;;  %v679_v15 = vld [vmem:[%s3213_s28 + $0x378] sm:$0xff] }
  0x94   : > { %v601_v28 = vld [vmem:[%s3213_s28 + $0x108] sm:$0xff]  ;;  %767 = vmatpush.msra.mxu3 %v669_v25  ;;  %v600_v34 = vld [vmem:[%s3213_s28 + $0x100] sm:$0xff]  ;;  %727 = vmatpush.msra.mxu1 %v668_v31  ;;  %v622_v16 = vld [vmem:[%s3213_s28 + $0x1b0] sm:$0xff] }
  0x95   : > { %v665_v29 = vld [vmem:[%s3213_s28 + $0x308] sm:$0xff]  ;;  %748 = vmatpush.msra.mxu2 %v601_v28  ;;  %v664_v35 = vld [vmem:[%s3213_s28 + $0x300] sm:$0xff]  ;;  %708 = vmatpush.msra.mxu0 %v600_v34  ;;  %v686_v17 = vld [vmem:[%s3213_s28 + $0x3b0] sm:$0xff] }
  0x96   : > { %v597_v32 = vld [vmem:[%s3213_s28 + $0xe8] sm:$0xff]  ;;  %768 = vmatpush.msra.mxu3 %v665_v29  ;;  %v596_v38 = vld [vmem:[%s3213_s28 + $0xe0] sm:$0xff]  ;;  %728 = vmatpush.msra.mxu1 %v664_v35  ;;  %v611_v18 = vld [vmem:[%s3213_s28 + $0x158] sm:$0xff] }
  0x97   : > { %v661_v33 = vld [vmem:[%s3213_s28 + $0x2e8] sm:$0xff]  ;;  %749 = vmatpush.msra.mxu2 %v597_v32  ;;  %v660_v39 = vld [vmem:[%s3213_s28 + $0x2e0] sm:$0xff]  ;;  %709 = vmatpush.msra.mxu0 %v596_v38  ;;  %v675_v19 = vld [vmem:[%s3213_s28 + $0x358] sm:$0xff] }
  0x98   : > { %v593_v36 = vld [vmem:[%s3213_s28 + $0xc8] sm:$0xff]  ;;  %769 = vmatpush.msra.mxu3 %v661_v33  ;;  %v592_v42 = vld [vmem:[%s3213_s28 + $0xc0] sm:$0xff]  ;;  %729 = vmatpush.msra.mxu1 %v660_v39  ;;  %v618_v20 = vld [vmem:[%s3213_s28 + $0x190] sm:$0xff] }
  0x99   : > { %v657_v37 = vld [vmem:[%s3213_s28 + $0x2c8] sm:$0xff]  ;;  %750 = vmatpush.msra.mxu2 %v593_v36  ;;  %v656_v43 = vld [vmem:[%s3213_s28 + $0x2c0] sm:$0xff]  ;;  %710 = vmatpush.msra.mxu0 %v592_v42  ;;  %v682_v21 = vld [vmem:[%s3213_s28 + $0x390] sm:$0xff] }
  0x9a   : > { %v589_v40 = vld [vmem:[%s3213_s28 + $0xa8] sm:$0xff]  ;;  %770 = vmatpush.msra.mxu3 %v657_v37  ;;  %v588_v46 = vld [vmem:[%s3213_s28 + $0xa0] sm:$0xff]  ;;  %730 = vmatpush.msra.mxu1 %v656_v43  ;;  %v607_v22 = vld [vmem:[%s3213_s28 + $0x138] sm:$0xff] }
  0x9b   : > { %v653_v41 = vld [vmem:[%s3213_s28 + $0x2a8] sm:$0xff]  ;;  %751 = vmatpush.msra.mxu2 %v589_v40  ;;  %v652_v47 = vld [vmem:[%s3213_s28 + $0x2a0] sm:$0xff]  ;;  %711 = vmatpush.msra.mxu0 %v588_v46  ;;  %v671_v23 = vld [vmem:[%s3213_s28 + $0x338] sm:$0xff] }
  0x9c   : > { %v585_v44 = vld [vmem:[%s3213_s28 + $0x88] sm:$0xff]  ;;  %771 = vmatpush.msra.mxu3 %v653_v41  ;;  %v584_v50 = vld [vmem:[%s3213_s28 + $0x80] sm:$0xff]  ;;  %731 = vmatpush.msra.mxu1 %v652_v47  ;;  %v614_v24 = vld [vmem:[%s3213_s28 + $0x170] sm:$0xff] }
  0x9d   : > { %v649_v45 = vld [vmem:[%s3213_s28 + $0x288] sm:$0xff]  ;;  %752 = vmatpush.msra.mxu2 %v585_v44  ;;  %v648_v51 = vld [vmem:[%s3213_s28 + $0x280] sm:$0xff]  ;;  %712 = vmatpush.msra.mxu0 %v584_v50  ;;  %v678_v25 = vld [vmem:[%s3213_s28 + $0x370] sm:$0xff] }
  0x9e   : > { %v581_v48 = vld [vmem:[%s3213_s28 + $0x68] sm:$0xff]  ;;  %772 = vmatpush.msra.mxu3 %v649_v45  ;;  %v580_v54 = vld [vmem:[%s3213_s28 + $0x60] sm:$0xff]  ;;  %732 = vmatpush.msra.mxu1 %v648_v51  ;;  %v564_v26 = vld [vmem:[%s3200_s17] sm:$0x3] }
  0x9f   : > { %v645_v49 = vld [vmem:[%s3213_s28 + $0x268] sm:$0xff]  ;;  %753 = vmatpush.msra.mxu2 %v581_v48  ;;  %v644_v55 = vld [vmem:[%s3213_s28 + $0x260] sm:$0xff]  ;;  %713 = vmatpush.msra.mxu0 %v580_v54  ;;  %v565_v27 = vld [vmem:[%s3207_s3] sm:$0x3] }
  0xa0   : > { %v577_v52 = vld [vmem:[%s3213_s28 + $0x48] sm:$0xff]  ;;  %773 = vmatpush.msra.mxu3 %v645_v49  ;;  %v576_v58 = vld [vmem:[%s3213_s28 + $0x40] sm:$0xff]  ;;  %733 = vmatpush.msra.mxu1 %v644_v55  ;;  %v603_v28 = vld [vmem:[%s3213_s28 + $0x118] sm:$0xff]  ;;  %v566_v34 = vadd.f32 %v565_v27, %v564_v26 }
  0xa1   : > { %v641_v53 = vld [vmem:[%s3213_s28 + $0x248] sm:$0xff]  ;;  %754 = vmatpush.msra.mxu2 %v577_v52  ;;  %v640_v59 = vld [vmem:[%s3213_s28 + $0x240] sm:$0xff]  ;;  %714 = vmatpush.msra.mxu0 %v576_v58  ;;  %v667_v29 = vld [vmem:[%s3213_s28 + $0x318] sm:$0xff] }
  0xa2   : > { %v573_v56 = vld [vmem:[%s3213_s28 + $0x28] sm:$0xff]  ;;  %774 = vmatpush.msra.mxu3 %v641_v53  ;;  %734 = vmatpush.msra.mxu1 %v640_v59  ;;  %v572_v0 = vld [vmem:[%s3213_s28 + $0x20] sm:$0xff]  ;;  %v610_v30 = vld [vmem:[%s3213_s28 + $0x150] sm:$0xff]  ;;  %v3337_v43 = vperm.slane %v566_v34, 0  ;;  %v3339_v44 = vperm.slane %v566_v34, 1 }
  0xa3   : > { %v637_v57 = vld [vmem:[%s3213_s28 + $0x228] sm:$0xff]  ;;  %755 = vmatpush.msra.mxu2 %v573_v56  ;;  %v636_v1 = vld [vmem:[%s3213_s28 + $0x220] sm:$0xff]  ;;  %715 = vmatpush.msra.mxu0 %v572_v0  ;;  %v674_v31 = vld [vmem:[%s3213_s28 + $0x350] sm:$0xff] }
  0xa4   : > { %v569_v60 = vld [vmem:[%s3213_s28 + $0x8] sm:$0xff]  ;;  %775 = vmatpush.msra.mxu3 %v637_v57  ;;  %v568_v4 = vld [vmem:[%s3213_s28] sm:$0xff]  ;;  %735 = vmatpush.msra.mxu1 %v636_v1  ;;  %v599_v32 = vld [vmem:[%s3213_s28 + $0xf8] sm:$0xff] }
  0xa5   : > { %v633_v61 = vld [vmem:[%s3213_s28 + $0x208] sm:$0xff]  ;;  %756 = vmatpush.msra.mxu2 %v569_v60  ;;  %v632_v5 = vld [vmem:[%s3213_s28 + $0x200] sm:$0xff]  ;;  %716 = vmatpush.msra.mxu0 %v568_v4  ;;  %v663_v33 = vld [vmem:[%s3213_s28 + $0x2f8] sm:$0xff] }
  0xa6   : > { %776 = vmatpush.msra.mxu3 %v633_v61  ;;  %736 = vmatpush.msra.mxu1 %v632_v5  ;;  %v606_v35 = vld [vmem:[%s3213_s28 + $0x130] sm:$0xff]  ;;  %v595_v37 = vld [vmem:[%s3213_s28 + $0xd8] sm:$0xff] }
  0xa7   : > { %821 = vmatpush.msrb.mxu2 %v631_v62  ;;  %781 = vmatpush.msrb.mxu0 %v630_v8  ;;  %v670_v36 = vld [vmem:[%s3213_s28 + $0x330] sm:$0xff]  ;;  %v659_v38 = vld [vmem:[%s3213_s28 + $0x2d8] sm:$0xff] }
  0xa8   : > { %841 = vmatpush.msrb.mxu3 %v695_v63  ;;  %801 = vmatpush.msrb.mxu1 %v694_v9  ;;  %v602_v39 = vld [vmem:[%s3213_s28 + $0x110] sm:$0xff]  ;;  %v591_v41 = vld [vmem:[%s3213_s28 + $0xb8] sm:$0xff] }
  0xa9   : > { %822 = vmatpush.msrb.mxu2 %v627_v2  ;;  %782 = vmatpush.msrb.mxu0 %v626_v12  ;;  %v666_v40 = vld [vmem:[%s3213_s28 + $0x310] sm:$0xff]  ;;  %v655_v42 = vld [vmem:[%s3213_s28 + $0x2b8] sm:$0xff] }
  0xaa   : > { %842 = vmatpush.msrb.mxu3 %v691_v3  ;;  %802 = vmatpush.msrb.mxu1 %v690_v13  ;;  %v598_v45 = vld [vmem:[%s3213_s28 + $0xf0] sm:$0xff]  ;;  %v587_v47 = vld [vmem:[%s3213_s28 + $0x98] sm:$0xff] }
  0xab   : > { %823 = vmatpush.msrb.mxu2 %v623_v6  ;;  %783 = vmatpush.msrb.mxu0 %v622_v16  ;;  %v662_v46 = vld [vmem:[%s3213_s28 + $0x2f0] sm:$0xff]  ;;  %v651_v48 = vld [vmem:[%s3213_s28 + $0x298] sm:$0xff] }
  0xac   : > { %843 = vmatpush.msrb.mxu3 %v687_v7  ;;  %803 = vmatpush.msrb.mxu1 %v686_v17  ;;  %v594_v49 = vld [vmem:[%s3213_s28 + $0xd0] sm:$0xff]  ;;  %v583_v51 = vld [vmem:[%s3213_s28 + $0x78] sm:$0xff] }
  0xad   : > { %824 = vmatpush.msrb.mxu2 %v619_v10  ;;  %784 = vmatpush.msrb.mxu0 %v618_v20  ;;  %v658_v50 = vld [vmem:[%s3213_s28 + $0x2d0] sm:$0xff]  ;;  %v647_v52 = vld [vmem:[%s3213_s28 + $0x278] sm:$0xff] }
  0xae   : > { %844 = vmatpush.msrb.mxu3 %v683_v11  ;;  %804 = vmatpush.msrb.mxu1 %v682_v21  ;;  %v590_v53 = vld [vmem:[%s3213_s28 + $0xb0] sm:$0xff]  ;;  %v579_v55 = vld [vmem:[%s3213_s28 + $0x58] sm:$0xff]  ;;  %v876_v21 = vlaneseq }
  0xaf   : > { %825 = vmatpush.msrb.mxu2 %v615_v14  ;;  %785 = vmatpush.msrb.mxu0 %v614_v24  ;;  %v654_v54 = vld [vmem:[%s3213_s28 + $0x2b0] sm:$0xff]  ;;  %v643_v56 = vld [vmem:[%s3213_s28 + $0x258] sm:$0xff] }
  0xb0   : > { %845 = vmatpush.msrb.mxu3 %v679_v15  ;;  %805 = vmatpush.msrb.mxu1 %v678_v25  ;;  %v586_v57 = vld [vmem:[%s3213_s28 + $0x90] sm:$0xff]  ;;  %v575_v59 = vld [vmem:[%s3213_s28 + $0x38] sm:$0xff]  ;;  %vm878_vm4 = vcmp.lt.s32.totalorder %v876_v21, 512 }
  0xb1   : > { %826 = vmatpush.msrb.mxu2 %v611_v18  ;;  %786 = vmatpush.msrb.mxu0 %v610_v30  ;;  %v650_v58 = vld [vmem:[%s3213_s28 + $0x290] sm:$0xff]  ;;  %v639_v60 = vld [vmem:[%s3213_s28 + $0x238] sm:$0xff] }
  0xb2   : > { %846 = vmatpush.msrb.mxu3 %v675_v19  ;;  %806 = vmatpush.msrb.mxu1 %v674_v31  ;;  %v582_v61 = vld [vmem:[%s3213_s28 + $0x70] sm:$0xff]  ;;  %v571_v63 = vld [vmem:[%s3213_s28 + $0x18] sm:$0xff] }
  0xb3   : > { %827 = vmatpush.msrb.mxu2 %v607_v22  ;;  %787 = vmatpush.msrb.mxu0 %v606_v35  ;;  %v646_v62 = vld [vmem:[%s3213_s28 + $0x270] sm:$0xff]  ;;  %v635_v0 = vld [vmem:[%s3213_s28 + $0x218] sm:$0xff] }
  0xb4   : > { %847 = vmatpush.msrb.mxu3 %v671_v23  ;;  %807 = vmatpush.msrb.mxu1 %v670_v36  ;;  %v578_v1 = vld [vmem:[%s3213_s28 + $0x50] sm:$0xff] }
  0xb5   : > { %828 = vmatpush.msrb.mxu2 %v603_v28  ;;  %788 = vmatpush.msrb.mxu0 %v602_v39  ;;  %v642_v2 = vld [vmem:[%s3213_s28 + $0x250] sm:$0xff] }
  0xb6   : > { %848 = vmatpush.msrb.mxu3 %v667_v29  ;;  %808 = vmatpush.msrb.mxu1 %v666_v40  ;;  %v574_v3 = vld [vmem:[%s3213_s28 + $0x30] sm:$0xff] }
  0xb7   : > { %829 = vmatpush.msrb.mxu2 %v599_v32  ;;  %777 = vmatmul.f32.vlgmr.msra.gmra.mxu3 %v3339_v44  ;;  %v638_v4 = vld [vmem:[%s3213_s28 + $0x230] sm:$0xff] }
  0xb8   : > { %849 = vmatpush.msrb.mxu3 %v663_v33  ;;  %757 = vmatmul.f32.vlgmr.msra.gmra.mxu2 %v3337_v43  ;;  %v570_v5 = vld [vmem:[%s3213_s28 + $0x10] sm:$0xff] }
  0xb9   : > { %830 = vmatpush.msrb.mxu2 %v595_v37  ;;  %789 = vmatpush.msrb.mxu0 %v598_v45  ;;  %v634_v6 = vld [vmem:[%s3213_s28 + $0x210] sm:$0xff] }
  0xba   : > { %850 = vmatpush.msrb.mxu3 %v659_v38  ;;  %809 = vmatpush.msrb.mxu1 %v662_v46  ;;  %v567_v23 = vld [vmem:[#allocation2] sm:$0xf] }
  0xbb   : > { %831 = vmatpush.msrb.mxu2 %v591_v41  ;;  %790 = vmatpush.msrb.mxu0 %v594_v49 }
  0xbc   : > { %851 = vmatpush.msrb.mxu3 %v655_v42  ;;  %810 = vmatpush.msrb.mxu1 %v658_v50 }
  0xbd   : > { %832 = vmatpush.msrb.mxu2 %v587_v47  ;;  %791 = vmatpush.msrb.mxu0 %v590_v53 }
  0xbe   : > { %852 = vmatpush.msrb.mxu3 %v651_v48  ;;  %811 = vmatpush.msrb.mxu1 %v654_v54 }
  0xbf   : > { %833 = vmatpush.msrb.mxu2 %v583_v51  ;;  %792 = vmatpush.msrb.mxu0 %v586_v57 }
  0xc0   : > { %853 = vmatpush.msrb.mxu3 %v647_v52  ;;  %812 = vmatpush.msrb.mxu1 %v650_v58 }
  0xc1   : > { %834 = vmatpush.msrb.mxu2 %v579_v55  ;;  %717 = vmatmul.f32.vlgmr.msra.gmra.mxu0 %v3337_v43 }
  0xc2   : > { %854 = vmatpush.msrb.mxu3 %v643_v56  ;;  %737 = vmatmul.f32.vlgmr.msra.gmra.mxu1 %v3339_v44 }
  0xc3   : > { %835 = vmatpush.msrb.mxu2 %v575_v59  ;;  %793 = vmatpush.msrb.mxu0 %v582_v61 }
  0xc4   : > { %855 = vmatpush.msrb.mxu3 %v639_v60  ;;  %813 = vmatpush.msrb.mxu1 %v646_v62 }
  0xc5   : > { %836 = vmatpush.msrb.mxu2 %v571_v63  ;;  %794 = vmatpush.msrb.mxu0 %v578_v1 }
  0xc6   : > { %856 = vmatpush.msrb.mxu3 %v635_v0  ;;  %837 = vmatmul.f32.vlgmr.msrb.gmra.mxu2 %v3337_v43 }
  0xc7   : > { %857 = vmatmul.f32.vlgmr.msrb.gmra.mxu3 %v3339_v44  ;;  %814 = vmatpush.msrb.mxu1 %v642_v2 }
  0xc8   : > { %795 = vmatpush.msrb.mxu0 %v574_v3 }
  0xc9   : > { %815 = vmatpush.msrb.mxu1 %v638_v4 }
  0xca   : > { %796 = vmatpush.msrb.mxu0 %v570_v5 }
  0xcb   : > { %816 = vmatpush.msrb.mxu1 %v634_v6  ;;  %797 = vmatmul.f32.vlgmr.msrb.gmra.mxu0 %v3337_v43 }
  0xcc   : > { %817 = vmatmul.f32.vlgmr.msrb.gmra.mxu1 %v3339_v44 }
 0x13a   : > { %v778_v10 = vpop.f32.mrf.mxu3 }
 0x13b   : > { %v758_v9 = vpop.f32.mrf.mxu2 }
 0x13c   : > { %v779_v11 = vadd.f32 %v778_v10, %v758_v9 }
 0x13e   : > { %v718_v7 = vpop.f32.mrf.mxu0  ;;  %v865_v17 = vrot.slane %v779_v11, 7 }
 0x13f   : > { %v738_v8 = vpop.f32.mrf.mxu1 }
 0x140   : > { %v739_v18 = vadd.f32 %v738_v8, %v718_v7 }
 0x142   : > { %v869_v24 = vsel %vm868_vm1, %v739_v18, %v865_v17 }
 0x148   : > { %v798_v12 = vpop.f32.mrf.mxu0 }
 0x149   : > { %v818_v13 = vpop.f32.mrf.mxu1  ;;  %v838_v15 = vpop.f32.mrf.mxu2 }
 0x14a   : > { %v819_v14 = vadd.f32 %v818_v13, %v798_v12  ;;  %v858_v16 = vpop.f32.mrf.mxu3 }
 0x14b   : > { %v859_v19 = vadd.f32 %v858_v16, %v838_v15 }
 0x14c   : > { %v866_v20 = vrot.slane %v819_v14, 6 }
 0x14d   : > { %v867_v22 = vrot.slane %v859_v19, 5 }
 0x14f   : > { %v871_v25 = vsel %vm870_vm2, %v866_v20, %v867_v22  ;;  %884 = sbr.rel (%p2380_p1) target bundleno = 1623 (0x657), region = 108 }
 0x150   : > { %v873_v26 = vsel %vm872_vm3, %v869_v24, %v871_v25 }
 0x151   : > { %v875_v27 = vadd.f32 %v873_v26, %v567_v23 }
 0x153   : > { %880 = vst.msk [vmem:[#allocation2] sm:$0xf] %vm878_vm4, %v875_v27 }
 0x154   : > { %v1137_v28 = vld [vmem:[#allocation11 + $0x2f0] sm:$0xff]  ;;  %v1135_v30 = vld [vmem:[#allocation11 + $0x2e0] sm:$0xff]  ;;  %v1138_v26 = vld [vmem:[#allocation11 + $0x2f8] sm:$0xff] }
 0x155   : > { %v1073_v29 = vld [vmem:[#allocation11 + $0xf0] sm:$0xff]  ;;  %1226 = vmatpush.msra.mxu2 %v1137_v28  ;;  %v1071_v32 = vld [vmem:[#allocation11 + $0xe0] sm:$0xff]  ;;  %v1074_v28 = vld [vmem:[#allocation11 + $0xf8] sm:$0xff] }
 0x156   : > { %1186 = vmatpush.msra.mxu0 %v1073_v29  ;;  %v1169_v31 = vld [vmem:[#allocation11 + $0x3f0] sm:$0xff]  ;;  %v1167_v35 = vld [vmem:[#allocation11 + $0x3e0] sm:$0xff]  ;;  %v1170_v29 = vld [vmem:[#allocation11 + $0x3f8] sm:$0xff] }
 0x157   : > { %v1105_v33 = vld [vmem:[#allocation11 + $0x1f0] sm:$0xff]  ;;  %1246 = vmatpush.msra.mxu3 %v1169_v31  ;;  %1227 = vmatpush.msra.mxu2 %v1135_v30  ;;  %v1103_v37 = vld [vmem:[#allocation11 + $0x1e0] sm:$0xff]  ;;  %v1136_v30 = vld [vmem:[#allocation11 + $0x2e8] sm:$0xff] }
 0x158   : > { %1206 = vmatpush.msra.mxu1 %v1105_v33  ;;  %v1133_v34 = vld [vmem:[#allocation11 + $0x2d0] sm:$0xff]  ;;  %1187 = vmatpush.msra.mxu0 %v1071_v32  ;;  %v1131_v39 = vld [vmem:[#allocation11 + $0x2c0] sm:$0xff]  ;;  %v1072_v32 = vld [vmem:[#allocation11 + $0xe8] sm:$0xff] }
 0x159   : > { %v1069_v36 = vld [vmem:[#allocation11 + $0xd0] sm:$0xff]  ;;  %1247 = vmatpush.msra.mxu3 %v1167_v35  ;;  %v1067_v40 = vld [vmem:[#allocation11 + $0xc0] sm:$0xff]  ;;  %1228 = vmatpush.msra.mxu2 %v1133_v34  ;;  %v1106_v33 = vld [vmem:[#allocation11 + $0x1f8] sm:$0xff] }
 0x15a   : > { %v1165_v38 = vld [vmem:[#allocation11 + $0x3d0] sm:$0xff]  ;;  %1207 = vmatpush.msra.mxu1 %v1103_v37  ;;  %1188 = vmatpush.msra.mxu0 %v1069_v36  ;;  %v1163_v42 = vld [vmem:[#allocation11 + $0x3c0] sm:$0xff]  ;;  %v1134_v34 = vld [vmem:[#allocation11 + $0x2d8] sm:$0xff] }
 0x15b   : > { %v1101_v41 = vld [vmem:[#allocation11 + $0x1d0] sm:$0xff]  ;;  %v1099_v43 = vld [vmem:[#allocation11 + $0x1c0] sm:$0xff]  ;;  %1248 = vmatpush.msra.mxu3 %v1165_v38  ;;  %1229 = vmatpush.msra.mxu2 %v1131_v39  ;;  %v1168_v35 = vld [vmem:[#allocation11 + $0x3e8] sm:$0xff] }
 0x15c   : > { %1208 = vmatpush.msra.mxu1 %v1101_v41  ;;  %v1129_v44 = vld [vmem:[#allocation11 + $0x2b0] sm:$0xff]  ;;  %1189 = vmatpush.msra.mxu0 %v1067_v40  ;;  %v1127_v48 = vld [vmem:[#allocation11 + $0x2a0] sm:$0xff]  ;;  %v1070_v36 = vld [vmem:[#allocation11 + $0xd8] sm:$0xff] }
 0x15d   : > { %v1065_v45 = vld [vmem:[#allocation11 + $0xb0] sm:$0xff]  ;;  %1249 = vmatpush.msra.mxu3 %v1163_v42  ;;  %v1063_v49 = vld [vmem:[#allocation11 + $0xa0] sm:$0xff]  ;;  %1230 = vmatpush.msra.mxu2 %v1129_v44  ;;  %v1104_v37 = vld [vmem:[#allocation11 + $0x1e8] sm:$0xff] }
 0x15e   : > { %v1161_v46 = vld [vmem:[#allocation11 + $0x3b0] sm:$0xff]  ;;  %1209 = vmatpush.msra.mxu1 %v1099_v43  ;;  %1190 = vmatpush.msra.mxu0 %v1065_v45  ;;  %v1159_v50 = vld [vmem:[#allocation11 + $0x3a0] sm:$0xff]  ;;  %v1132_v38 = vld [vmem:[#allocation11 + $0x2c8] sm:$0xff] }
 0x15f   : > { %v1097_v47 = vld [vmem:[#allocation11 + $0x1b0] sm:$0xff]  ;;  %v1095_v51 = vld [vmem:[#allocation11 + $0x1a0] sm:$0xff]  ;;  %1250 = vmatpush.msra.mxu3 %v1161_v46  ;;  %1231 = vmatpush.msra.mxu2 %v1127_v48  ;;  %v1166_v39 = vld [vmem:[#allocation11 + $0x3d8] sm:$0xff] }
 0x160   : > { %1210 = vmatpush.msra.mxu1 %v1097_v47  ;;  %v1125_v52 = vld [vmem:[#allocation11 + $0x290] sm:$0xff]  ;;  %1191 = vmatpush.msra.mxu0 %v1063_v49  ;;  %v1123_v56 = vld [vmem:[#allocation11 + $0x280] sm:$0xff]  ;;  %v1068_v40 = vld [vmem:[#allocation11 + $0xc8] sm:$0xff] }
 0x161   : > { %v1061_v53 = vld [vmem:[#allocation11 + $0x90] sm:$0xff]  ;;  %1251 = vmatpush.msra.mxu3 %v1159_v50  ;;  %v1059_v57 = vld [vmem:[#allocation11 + $0x80] sm:$0xff]  ;;  %1232 = vmatpush.msra.mxu2 %v1125_v52  ;;  %v1102_v41 = vld [vmem:[#allocation11 + $0x1d8] sm:$0xff] }
 0x162   : > { %v1157_v54 = vld [vmem:[#allocation11 + $0x390] sm:$0xff]  ;;  %1211 = vmatpush.msra.mxu1 %v1095_v51  ;;  %1192 = vmatpush.msra.mxu0 %v1061_v53  ;;  %v1155_v58 = vld [vmem:[#allocation11 + $0x380] sm:$0xff]  ;;  %v886_v43 = vld [vmem:[#allocation9] sm:$0xf] }
 0x163   : > { %v1093_v55 = vld [vmem:[#allocation11 + $0x190] sm:$0xff]  ;;  %v1091_v59 = vld [vmem:[#allocation11 + $0x180] sm:$0xff]  ;;  %1252 = vmatpush.msra.mxu3 %v1157_v54  ;;  %1233 = vmatpush.msra.mxu2 %v1123_v56  ;;  %v1130_v44 = vld [vmem:[#allocation11 + $0x2b8] sm:$0xff] }
 0x164   : > { %1212 = vmatpush.msra.mxu1 %v1093_v55  ;;  %v1121_v60 = vld [vmem:[#allocation11 + $0x270] sm:$0xff]  ;;  %1193 = vmatpush.msra.mxu0 %v1059_v57  ;;  %v1119_v0 = vld [vmem:[#allocation11 + $0x260] sm:$0xff]  ;;  %v1164_v45 = vld [vmem:[#allocation11 + $0x3c8] sm:$0xff] }
 0x165   : > { %v1057_v61 = vld [vmem:[#allocation11 + $0x70] sm:$0xff]  ;;  %1253 = vmatpush.msra.mxu3 %v1155_v58  ;;  %v1055_v1 = vld [vmem:[#allocation11 + $0x60] sm:$0xff]  ;;  %1234 = vmatpush.msra.mxu2 %v1121_v60  ;;  %v1066_v47 = vld [vmem:[#allocation11 + $0xb8] sm:$0xff] }
 0x166   : > { %v1153_v62 = vld [vmem:[#allocation11 + $0x370] sm:$0xff]  ;;  %1213 = vmatpush.msra.mxu1 %v1091_v59  ;;  %1194 = vmatpush.msra.mxu0 %v1057_v61  ;;  %v1151_v2 = vld [vmem:[#allocation11 + $0x360] sm:$0xff]  ;;  %v1100_v48 = vld [vmem:[#allocation11 + $0x1c8] sm:$0xff] }
 0x167   : > { %v1089_v63 = vld [vmem:[#allocation11 + $0x170] sm:$0xff]  ;;  %v1087_v3 = vld [vmem:[#allocation11 + $0x160] sm:$0xff]  ;;  %1254 = vmatpush.msra.mxu3 %v1153_v62  ;;  %1235 = vmatpush.msra.mxu2 %v1119_v0  ;;  %v1128_v49 = vld [vmem:[#allocation11 + $0x2a8] sm:$0xff] }
 0x168   : > { %1214 = vmatpush.msra.mxu1 %v1089_v63  ;;  %v1117_v4 = vld [vmem:[#allocation11 + $0x250] sm:$0xff]  ;;  %1195 = vmatpush.msra.mxu0 %v1055_v1  ;;  %v1115_v8 = vld [vmem:[#allocation11 + $0x240] sm:$0xff]  ;;  %v1162_v50 = vld [vmem:[#allocation11 + $0x3b8] sm:$0xff] }
 0x169   : > { %v1053_v5 = vld [vmem:[#allocation11 + $0x50] sm:$0xff]  ;;  %1255 = vmatpush.msra.mxu3 %v1151_v2  ;;  %v1051_v9 = vld [vmem:[#allocation11 + $0x40] sm:$0xff]  ;;  %1236 = vmatpush.msra.mxu2 %v1117_v4  ;;  %v1064_v52 = vld [vmem:[#allocation11 + $0xa8] sm:$0xff] }
 0x16a   : > { %v1149_v6 = vld [vmem:[#allocation11 + $0x350] sm:$0xff]  ;;  %1215 = vmatpush.msra.mxu1 %v1087_v3  ;;  %1196 = vmatpush.msra.mxu0 %v1053_v5  ;;  %v1147_v10 = vld [vmem:[#allocation11 + $0x340] sm:$0xff]  ;;  %v1098_v53 = vld [vmem:[#allocation11 + $0x1b8] sm:$0xff] }
 0x16b   : > { %v1085_v7 = vld [vmem:[#allocation11 + $0x150] sm:$0xff]  ;;  %v1083_v11 = vld [vmem:[#allocation11 + $0x140] sm:$0xff]  ;;  %1256 = vmatpush.msra.mxu3 %v1149_v6  ;;  %1237 = vmatpush.msra.mxu2 %v1115_v8  ;;  %v1126_v54 = vld [vmem:[#allocation11 + $0x298] sm:$0xff] }
 0x16c   : > { %1216 = vmatpush.msra.mxu1 %v1085_v7  ;;  %v1113_v12 = vld [vmem:[#allocation11 + $0x230] sm:$0xff]  ;;  %1197 = vmatpush.msra.mxu0 %v1051_v9  ;;  %v1111_v16 = vld [vmem:[#allocation11 + $0x220] sm:$0xff]  ;;  %v1160_v55 = vld [vmem:[#allocation11 + $0x3a8] sm:$0xff] }
 0x16d   : > { %v1049_v13 = vld [vmem:[#allocation11 + $0x30] sm:$0xff]  ;;  %1257 = vmatpush.msra.mxu3 %v1147_v10  ;;  %v1047_v17 = vld [vmem:[#allocation11 + $0x20] sm:$0xff]  ;;  %1238 = vmatpush.msra.mxu2 %v1113_v12  ;;  %v1062_v57 = vld [vmem:[#allocation11 + $0x98] sm:$0xff] }
 0x16e   : > { %v1145_v14 = vld [vmem:[#allocation11 + $0x330] sm:$0xff]  ;;  %1217 = vmatpush.msra.mxu1 %v1083_v11  ;;  %1198 = vmatpush.msra.mxu0 %v1049_v13  ;;  %v1143_v18 = vld [vmem:[#allocation11 + $0x320] sm:$0xff]  ;;  %v1096_v58 = vld [vmem:[#allocation11 + $0x1a8] sm:$0xff] }
 0x16f   : > { %v1081_v15 = vld [vmem:[#allocation11 + $0x130] sm:$0xff]  ;;  %v1079_v19 = vld [vmem:[#allocation11 + $0x120] sm:$0xff]  ;;  %1258 = vmatpush.msra.mxu3 %v1145_v14  ;;  %1239 = vmatpush.msra.mxu2 %v1111_v16  ;;  %v1124_v59 = vld [vmem:[#allocation11 + $0x288] sm:$0xff] }
 0x170   : > { %1218 = vmatpush.msra.mxu1 %v1081_v15  ;;  %v1109_v20 = vld [vmem:[#allocation11 + $0x210] sm:$0xff]  ;;  %1199 = vmatpush.msra.mxu0 %v1047_v17  ;;  %v1107_v24 = vld [vmem:[#allocation11 + $0x200] sm:$0xff]  ;;  %v1158_v60 = vld [vmem:[#allocation11 + $0x398] sm:$0xff] }
 0x171   : > { %v1045_v21 = vld [vmem:[#allocation11 + $0x10] sm:$0xff]  ;;  %1259 = vmatpush.msra.mxu3 %v1143_v18  ;;  %v1043_v25 = vld [vmem:[#allocation11] sm:$0xff]  ;;  %1240 = vmatpush.msra.mxu2 %v1109_v20  ;;  %v1060_v63 = vld [vmem:[#allocation11 + $0x88] sm:$0xff] }
 0x172   : > { %v1141_v22 = vld [vmem:[#allocation11 + $0x310] sm:$0xff]  ;;  %1219 = vmatpush.msra.mxu1 %v1079_v19  ;;  %1200 = vmatpush.msra.mxu0 %v1045_v21  ;;  %v1139_v27 = vld [vmem:[#allocation11 + $0x300] sm:$0xff]  ;;  %v1094_v0 = vld [vmem:[#allocation11 + $0x198] sm:$0xff] }
 0x173   : > { %v1077_v23 = vld [vmem:[#allocation11 + $0x110] sm:$0xff]  ;;  %1260 = vmatpush.msra.mxu3 %v1141_v22  ;;  %1241 = vmatpush.msra.mxu2 %v1107_v24  ;;  %v1075_v31 = vld [vmem:[#allocation11 + $0x100] sm:$0xff]  ;;  %v1122_v1 = vld [vmem:[#allocation11 + $0x278] sm:$0xff]  ;;  %v2959_v22 = vmov 683565275  }
 0x174   : > { %1220 = vmatpush.msra.mxu1 %v1077_v23  ;;  %1201 = vmatpush.msra.mxu0 %v1043_v25  ;;  %v885_v42 = vld [vmem:[#allocation2] sm:$0xf]  ;;  %v1156_v2 = vld [vmem:[#allocation11 + $0x388] sm:$0xff]  ;;  %v1058_v4 = vld [vmem:[#allocation11 + $0x78] sm:$0xff]  ;;  %v2960_v24 = vmov 2475754826  }
 0x175   : > { %1306 = vmatpush.msrb.mxu2 %v1138_v26  ;;  %1261 = vmatpush.msra.mxu3 %v1139_v27  ;;  %v3376_v46 = vadd.f32 %v886_v43, %v885_v42  ;;  %v1092_v5 = vld [vmem:[#allocation11 + $0x188] sm:$0xff]  ;;  %v1154_v7 = vld [vmem:[#allocation11 + $0x378] sm:$0xff]  ;;  %v2961_v26 = vmov 2131351028  }
 0x176   : > { %1266 = vmatpush.msrb.mxu0 %v1074_v28  ;;  %1221 = vmatpush.msra.mxu1 %v1075_v31  ;;  %v1120_v6 = vld [vmem:[#allocation11 + $0x268] sm:$0xff]  ;;  %v1090_v10 = vld [vmem:[#allocation11 + $0x178] sm:$0xff]  ;;  %v2962_v28 = vmov 2102212464  }
 0x177   : > { %1326 = vmatpush.msrb.mxu3 %v1170_v29  ;;  %1307 = vmatpush.msrb.mxu2 %v1136_v30  ;;  %v891_v51 = vand.u32 2139095040, %v3376_v46  ;;  %v888_v61 = vand.u32 2147483647, %v3376_v46  ;;  %v1056_v9 = vld [vmem:[#allocation11 + $0x68] sm:$0xff]  ;;  %v1118_v12 = vld [vmem:[#allocation11 + $0x258] sm:$0xff]  ;;  %vm890_vm1 = vcmp.lt.s32.totalorder %v3376_v46, 0 }
 0x178   : > { %1267 = vmatpush.msrb.mxu0 %v1072_v32  ;;  %1286 = vmatpush.msrb.mxu1 %v1106_v33  ;;  %v1152_v13 = vld [vmem:[#allocation11 + $0x368] sm:$0xff]  ;;  %v1054_v15 = vld [vmem:[#allocation11 + $0x58] sm:$0xff]  ;;  %v2963_v30 = vmov 920167782  }
 0x179   : > { %1308 = vmatpush.msrb.mxu2 %v1134_v34  ;;  %1327 = vmatpush.msrb.mxu3 %v1168_v35  ;;  %v892_v56 = vshrl.u32 %v891_v51, 23  ;;  %v895_v8 = vand.u32 8388607, %v888_v61  ;;  %v1088_v16 = vld [vmem:[#allocation11 + $0x168] sm:$0xff]  ;;  %v1150_v19 = vld [vmem:[#allocation11 + $0x358] sm:$0xff] }
 0x17a   : > { %1268 = vmatpush.msrb.mxu0 %v1070_v36  ;;  %1287 = vmatpush.msrb.mxu1 %v1104_v37  ;;  %v1116_v18 = vld [vmem:[#allocation11 + $0x248] sm:$0xff]  ;;  %v2964_v36 = vmov 1326507024   ;;  %vm3435_vm2 = vcmp.le.f32.partialorder %v888_v61, 0.7853982 }
 0x17b   : > { %1309 = vmatpush.msrb.mxu2 %v1132_v38  ;;  %1328 = vmatpush.msrb.mxu3 %v1166_v39  ;;  %v2381_v62 = vadd.s32 4294967169, %v892_v56  ;;  %v896_v20 = vor.u32 8388608, %v895_v8 }
 0x17c   : > { %1269 = vmatpush.msrb.mxu0 %v1068_v40  ;;  %1288 = vmatpush.msrb.mxu1 %v1102_v41 }
 0x17d   : > { %1310 = vmatpush.msrb.mxu2 %v1130_v44  ;;  %1329 = vmatpush.msrb.mxu3 %v1164_v45  ;;  %v898_v3 = vadd.s32 1, %v2381_v62  ;;  %v3396_v40 = vshll.u32 %v896_v20, 8 }
 0x17e   : > { %1270 = vmatpush.msrb.mxu0 %v1066_v47  ;;  %1289 = vmatpush.msrb.mxu1 %v1100_v48 }
 0x17f   : > { %1311 = vmatpush.msrb.mxu2 %v1128_v49  ;;  %1330 = vmatpush.msrb.mxu3 %v1162_v50  ;;  %vm899_vm5 = vcmp.gt.s32.totalorder %v898_v3, 0  ;;  %v937_v51 = vand.u32 65535, %v3396_v40 }
 0x180   : > { %1271 = vmatpush.msrb.mxu0 %v1064_v52  ;;  %1290 = vmatpush.msrb.mxu1 %v1098_v53  ;;  %v900_v11 = vsel %vm899_vm5, %v898_v3, 0  ;;  %v938_v52 = vshrl.u32 %v3396_v40, 16 }
 0x181   : > { %1312 = vmatpush.msrb.mxu2 %v1126_v54  ;;  %1331 = vmatpush.msrb.mxu3 %v1160_v55  ;;  %v902_v14 = vand.u32 31, %v900_v11  ;;  %v3382_v17 = vshrl.u32 %v900_v11, 5 }
 0x182   : > { %1272 = vmatpush.msrb.mxu0 %v1062_v57  ;;  %1291 = vmatpush.msrb.mxu1 %v1096_v58 }
 0x183   : > { %1313 = vmatpush.msrb.mxu2 %v1124_v59  ;;  %1332 = vmatpush.msrb.mxu3 %v1158_v60  ;;  %v903_v21 = vsub.s32 32, %v902_v14  ;;  %v905_v23 = vshll.u32 %v2959_v22, %v902_v14  ;;  %v908_v25 = vshll.u32 %v2960_v24, %v902_v14  ;;  %v911_v27 = vshll.u32 %v2961_v26, %v902_v14 }
 0x184   : > { %1273 = vmatpush.msrb.mxu0 %v1060_v63  ;;  %1292 = vmatpush.msrb.mxu1 %v1094_v0  ;;  %v914_v29 = vshll.u32 %v2962_v28, %v902_v14  ;;  %v917_v31 = vshll.u32 %v2963_v30, %v902_v14  ;;  %vm920_vm6 = vcmp.lt.s32.totalorder %v3382_v17, 1  ;;  %vm923_vm7 = vcmp.lt.s32.totalorder %v3382_v17, 4 }
 0x185   : > { %1314 = vmatpush.msrb.mxu2 %v1122_v1  ;;  %1333 = vmatpush.msrb.mxu3 %v1156_v2  ;;  %v906_v32 = vshrl.u32 %v2960_v24, %v903_v21  ;;  %v909_v33 = vshrl.u32 %v2961_v26, %v903_v21  ;;  %v912_v34 = vshrl.u32 %v2962_v28, %v903_v21  ;;  %vm922_vm8 = vcmp.lt.s32.totalorder %v3382_v17, 3 }
 0x186   : > { %1274 = vmatpush.msrb.mxu0 %v1058_v4  ;;  %1293 = vmatpush.msrb.mxu1 %v1092_v5  ;;  %v915_v35 = vshrl.u32 %v2963_v30, %v903_v21  ;;  %v918_v37 = vshrl.u32 %v2964_v36, %v903_v21  ;;  %vm921_vm9 = vcmp.lt.s32.totalorder %v3382_v17, 2  ;;  %v904_v59 = vshrl.u32 %v2959_v22, %v903_v21 }
 0x187   : > { %1315 = vmatpush.msrb.mxu2 %v1120_v6  ;;  %1334 = vmatpush.msrb.mxu3 %v1154_v7  ;;  %v907_v38 = vor.u32 %v906_v32, %v905_v23  ;;  %v910_v39 = vor.u32 %v909_v33, %v908_v25  ;;  %v913_v41 = vor.u32 %v912_v34, %v911_v27 }
 0x188   : > { %1275 = vmatpush.msrb.mxu0 %v1056_v9  ;;  %1294 = vmatpush.msrb.mxu1 %v1090_v10  ;;  %v916_v42 = vor.u32 %v915_v35, %v914_v29  ;;  %v919_v43 = vor.u32 %v918_v37, %v917_v31 }
 0x189   : > { %1316 = vmatpush.msrb.mxu2 %v1118_v12  ;;  %1335 = vmatpush.msrb.mxu3 %v1152_v13  ;;  %v928_v44 = vsel %vm920_vm6, %v907_v38, %v910_v39  ;;  %v932_v47 = vsel %vm920_vm6, %v910_v39, %v913_v41  ;;  %v924_v9 = vsel %vm920_vm6, %v904_v59, %v907_v38  ;;  %v925_v11 = vsel %vm923_vm7, %v913_v41, 2102212464 }
 0x18a   : > { %1276 = vmatpush.msrb.mxu0 %v1054_v15  ;;  %1295 = vmatpush.msrb.mxu1 %v1088_v16  ;;  %v929_v45 = vsel %vm923_vm7, %v916_v42, 920167782  ;;  %v933_v48 = vsel %vm923_vm7, %v919_v43, 1326507024  ;;  %v2965_v12 = vmov 0   ;;  %v926_v23 = vsel %vm922_vm8, %v910_v39, %v925_v11  ;;  %v1082_v11 = vld [vmem:[#allocation11 + $0x138] sm:$0xff] }
 0x18b   : > { %1317 = vmatpush.msrb.mxu2 %v1116_v18  ;;  %1336 = vmatpush.msrb.mxu3 %v1150_v19  ;;  %v930_v49 = vsel %vm922_vm8, %v913_v41, %v929_v45  ;;  %v934_v50 = vsel %vm922_vm8, %v916_v42, %v933_v48  ;;  %v927_v35 = vsel %vm921_vm9, %v924_v9, %v926_v23  ;;  %v1048_v9 = vld [vmem:[#allocation11 + $0x28] sm:$0xff]  ;;  %v1142_v23 = vld [vmem:[#allocation11 + $0x318] sm:$0xff]  ;;  %vm1031_vm6 = vweird.f32 %v3376_v46 }
 0x18c   : > { %v931_v53 = vsel %vm921_vm9, %v928_v44, %v930_v49  ;;  %v935_v54 = vsel %vm921_vm9, %v932_v47, %v934_v50  ;;  %v981_v42 = vmul.u32 %v3396_v40, %v927_v35 }
 0x18d   : > { %v939_v55 = vand.u32 65535, %v935_v54  ;;  %v940_v56 = vshrl.u32 %v935_v54, 16  ;;  %v961_v57 = vand.u32 65535, %v931_v53  ;;  %v962_v58 = vshrl.u32 %v931_v53, 16 }
 0x18f   : > { %v941_v60 = vmul.u32 %v939_v55, %v937_v51  ;;  %v942_v62 = vmul.u32 %v940_v56, %v937_v51  ;;  %v943_v63 = vmul.u32 %v939_v55, %v938_v52  ;;  %v963_v0 = vmul.u32 %v961_v57, %v937_v51 }
 0x190   : > { %v964_v1 = vmul.u32 %v962_v58, %v937_v51  ;;  %v965_v2 = vmul.u32 %v961_v57, %v938_v52  ;;  %v944_v3 = vmul.u32 %v940_v56, %v938_v52  ;;  %v966_v6 = vmul.u32 %v962_v58, %v938_v52 }
 0x191   : > { %v945_v4 = vshll.u32 %v942_v62, 16  ;;  %v947_v5 = vshll.u32 %v943_v63, 16  ;;  %v946_v15 = vshrl.u32 %v942_v62, 16  ;;  %v948_v25 = vshrl.u32 %v943_v63, 16 }
 0x192   : > { %v967_v7 = vshll.u32 %v964_v1, 16  ;;  %v969_v8 = vshll.u32 %v965_v2, 16  ;;  %v968_v20 = vshrl.u32 %v964_v1, 16  ;;  %v970_v31 = vshrl.u32 %v965_v2, 16  ;;  %v1086_v1 = vld [vmem:[#allocation11 + $0x158] sm:$0xff] }
 0x193   : > { %vm949_vm10 = vc.u32 %v941_v60, %v945_v4  ;;  %v951_v10 = vadd.s32 %v945_v4, %v941_v60  ;;  %v1114_v2 = vld [vmem:[#allocation11 + $0x238] sm:$0xff]  ;;  %1296 = vmatpush.msrb.mxu1 %v1086_v1  ;;  %v1148_v4 = vld [vmem:[#allocation11 + $0x348] sm:$0xff] }
 0x194   : > { %v950_v13 = vsel %vm949_vm10, 1, %v2965_v12  ;;  %vm971_vm11 = vc.u32 %v963_v0, %v967_v7  ;;  %v973_v14 = vadd.s32 %v967_v7, %v963_v0  ;;  %v1052_v0 = vld [vmem:[#allocation11 + $0x48] sm:$0xff]  ;;  %1318 = vmatpush.msrb.mxu2 %v1114_v2  ;;  %1337 = vmatpush.msrb.mxu3 %v1148_v4 }
 0x195   : > { %v952_v16 = vadd.s32 %v950_v13, %v944_v3  ;;  %vm953_vm12 = vc.u32 %v951_v10, %v947_v5  ;;  %v972_v18 = vsel %vm971_vm11, 1, %v2965_v12  ;;  %1277 = vmatpush.msrb.mxu0 %v1052_v0  ;;  %v1050_v5 = vld [vmem:[#allocation11 + $0x38] sm:$0xff]  ;;  %v1112_v7 = vld [vmem:[#allocation11 + $0x228] sm:$0xff] }
 0x196   : > { %v954_v19 = vsel %vm953_vm12, 1, %v2965_v12  ;;  %v974_v21 = vadd.s32 %v972_v18, %v966_v6  ;;  %vm975_vm13 = vc.u32 %v973_v14, %v969_v8  ;;  %v977_v34 = vadd.s32 %v973_v14, %v969_v8  ;;  %v1084_v6 = vld [vmem:[#allocation11 + $0x148] sm:$0xff]  ;;  %v1146_v8 = vld [vmem:[#allocation11 + $0x338] sm:$0xff]  ;;  %1319 = vmatpush.msrb.mxu2 %v1112_v7 }
 0x197   : > { %v956_v27 = vadd.s32 %v954_v19, %v952_v16  ;;  %v976_v29 = vsel %vm975_vm13, 1, %v2965_v12  ;;  %1278 = vmatpush.msrb.mxu0 %v1050_v5  ;;  %1297 = vmatpush.msrb.mxu1 %v1084_v6  ;;  %v1110_v13 = vld [vmem:[#allocation11 + $0x218] sm:$0xff]  ;;  %v1144_v14 = vld [vmem:[#allocation11 + $0x328] sm:$0xff] }
 0x198   : > { %v978_v32 = vadd.s32 %v976_v29, %v974_v21  ;;  %1338 = vmatpush.msrb.mxu3 %v1146_v8  ;;  %v1046_v16 = vld [vmem:[#allocation11 + $0x18] sm:$0xff]  ;;  %v1080_v18 = vld [vmem:[#allocation11 + $0x128] sm:$0xff]  ;;  %1320 = vmatpush.msrb.mxu2 %v1110_v13 }
 0x199   : > { %v957_v33 = vadd.s32 %v956_v27, %v946_v15  ;;  %1279 = vmatpush.msrb.mxu0 %v1048_v9  ;;  %1298 = vmatpush.msrb.mxu1 %v1082_v11  ;;  %v1108_v21 = vld [vmem:[#allocation11 + $0x208] sm:$0xff] }
 0x19a   : > { %v979_v37 = vadd.s32 %v978_v32, %v968_v20  ;;  %1339 = vmatpush.msrb.mxu3 %v1144_v14  ;;  %1321 = vmatpush.msrb.mxu2 %v1108_v21  ;;  %v1044_v29 = vld [vmem:[#allocation11 + $0x8] sm:$0xff] }
 0x19b   : > { %v958_v38 = vadd.s32 %v957_v33, %v948_v25  ;;  %1280 = vmatpush.msrb.mxu0 %v1046_v16  ;;  %1299 = vmatpush.msrb.mxu1 %v1080_v18  ;;  %v1140_v32 = vld [vmem:[#allocation11 + $0x308] sm:$0xff] }
 0x19c   : > { %v980_v41 = vadd.s32 %v979_v37, %v970_v31  ;;  %1340 = vmatpush.msrb.mxu3 %v1142_v23  ;;  %v1078_v31 = vld [vmem:[#allocation11 + $0x118] sm:$0xff] }
 0x19d   : > { %vm983_vm14 = vc.u32 %v958_v38, %v977_v34  ;;  %v982_v17 = vadd.s32 %v977_v34, %v958_v38  ;;  %1281 = vmatpush.msrb.mxu0 %v1044_v29  ;;  %1300 = vmatpush.msrb.mxu1 %v1078_v31  ;;  %v1076_v34 = vld [vmem:[#allocation11 + $0x108] sm:$0xff] }
 0x19e   : > { %v984_v43 = vadd.s32 1, %v980_v41  ;;  %1341 = vmatpush.msrb.mxu3 %v1140_v32 }
 0x19f   : > { %1301 = vmatpush.msrb.mxu1 %v1076_v34 }
 0x1a0   : > { %v985_v44 = vsel %vm983_vm14, %v984_v43, %v980_v41 }
 0x1a1   : > { %v986_v39 = vadd.s32 %v985_v44, %v981_v42 }
 0x1a3   : > { %v987_v45 = vadd.s32 536870912, %v986_v39 }
 0x1a5   : > { %v988_v47 = vshrl.u32 %v987_v45, 30 }
 0x1a7   : > { %v989_v48 = vshll.u32 %v988_v47, 30  ;;  %v1012_v15 = vsub.s32 4, %v988_v47 }
 0x1a9   : > { %v990_v49 = vsub.s32 %v986_v39, %v989_v48  ;;  %v1013_v27 = vsel %vm890_vm1, %v1012_v15, %v988_v47 }
 0x1aa   : > { %v1015_v35 = vsel %vm3435_vm2, 0, %v1013_v27 }
 0x1ab   : > { %vm991_vm15 = vcmp.lt.s32.totalorder %v990_v49, 0  ;;  %v992_v50 = vsub.s32 0, %v990_v49  ;;  %v1032_v43 = vadd.s32 3, %v1015_v35 }
 0x1ad   : > { %v993_v51 = vsel %vm991_vm15, %v992_v50, %v990_v49  ;;  %v1033_v48 = vand.u32 3, %v1032_v43 }
 0x1ae   : > { %v994_v52 = vclz %v993_v51 }
 0x1af   : > { %vm1038_vm3 = vcmp.eq.s32.totalorder %v1033_v48, 2  ;;  %vm1035_vm4 = vcmp.eq.s32.totalorder %v1033_v48, 0  ;;  %vm1034_vm5 = vcmp.lt.s32.totalorder %v1033_v48, 2  ;;  %v1670_v48 = vld [vmem:[#allocation14 + $0x70] sm:$0xff] }
 0x1b0   : > { %v2382_v53 = vadd.s32 4294967294, %v994_v52 }
 0x1b2   : > { %vm2383_vm0 = vcmp.lt.s32.totalorder %v2382_v53, 0 }
 0x1b3   : > { %v997_v54 = vsel %vm2383_vm0, 0, %v2382_v53 }
 0x1b4   : > { %v998_v55 = vsub.s32 32, %v997_v54  ;;  %v999_v56 = vshll.u32 %v990_v49, %v997_v54  ;;  %v1002_v57 = vsub.s32 4294967266, %v997_v54 }
 0x1b6   : > { %v1000_v40 = vshrl.u32 %v982_v17, %v998_v55  ;;  %v1003_v58 = vadd.s32 127, %v1002_v57 }
 0x1b8   : > { %v1001_v59 = vor.u32 %v1000_v40, %v999_v56  ;;  %v1004_v60 = vshll.u32 %v1003_v58, 23 }
 0x1ba   : > { %v1005_v62 = vor.u32 4788187, %v1004_v60  ;;  %v1008_v63 = vcvt.s32.f32 %v1001_v59 }
 0x1bc   : > { %v1006_v3 = vand.u32 2147483647, %v1005_v62 }
 0x1be   : > { %v1009_v10 = vmul.f32 %v1008_v63, %v1006_v3  ;;  %v1171_v63 = vld [vmem:[#allocation12] sm:$0x3] }
 0x1bf   : > { %v1182_v0 = vperm.slane %v1171_v63, 0  ;;  %v1183_v4 = vperm.slane %v1171_v63, 1 }
 0x1c0   : > { %v1010_v20 = vxor.u32 2147483648, %v1009_v10 }
 0x1c2   : > { %v1011_v25 = vsel %vm890_vm1, %v1010_v20, %v1009_v10 }
 0x1c3   : > { %v1014_v61 = vsel %vm3435_vm2, %v3376_v46, %v1011_v25 }
 0x1c4   : > { %v1016_v33 = vmul.f32 %v1014_v61, %v1014_v61 }
 0x1c6   : > { %v1017_v37 = vmul.f32 -0.001358992, %v1016_v33  ;;  %v1024_v38 = vmul.f32 -0.00019511016, %v1016_v33 }
 0x1c8   : > { %v1018_v41 = vadd.f32 0.041655596, %v1017_v37  ;;  %v1025_v42 = vadd.f32 0.008332121, %v1024_v38 }
 0x1ca   : > { %v1019_v44 = vmul.f32 %v1018_v41, %v1016_v33  ;;  %v1026_v39 = vmul.f32 %v1025_v42, %v1016_v33 }
 0x1cc   : > { %v1020_v45 = vadd.f32 -0.4999988, %v1019_v44  ;;  %v1027_v47 = vadd.f32 -0.16666654, %v1026_v39 }
 0x1ce   : > { %v1021_v49 = vmul.f32 %v1020_v45, %v1016_v33  ;;  %v1028_v50 = vmul.f32 %v1027_v47, %v1016_v33  ;;  %v1671_v47 = vld [vmem:[#allocation14 + $0x78] sm:$0xff] }
 0x1d0   : > { %v1022_v51 = vadd.f32 1.0, %v1021_v49  ;;  %v1029_v52 = vadd.f32 1.0, %v1028_v50 }
 0x1d2   : > { %v1030_v53 = vmul.f32 %v1029_v52, %v1014_v61  ;;  %v1039_v17 = vxor.u32 2147483648, %v1022_v51 }
 0x1d4   : > { %v1036_v54 = vxor.u32 2147483648, %v1030_v53  ;;  %v1040_v55 = vsel %vm1038_vm3, %v1039_v17, %v1030_v53  ;;  %v1687_v53 = vld [vmem:[#allocation14 + $0xf8] sm:$0xff] }
 0x1d6   : > { %v1037_v56 = vsel %vm1035_vm4, %v1022_v51, %v1036_v54 }
 0x1d7   : > { %v1041_v57 = vsel %vm1034_vm5, %v1037_v56, %v1040_v55 }
 0x1d8   : > { %v1042_v40 = vsel %vm1031_vm6, nan, %v1041_v57  ;;  %v1669_v57 = vld [vmem:[#allocation14 + $0x68] sm:$0xff] }
 0x1d9   : > { %v1175_v58 = vperm.slane %v1042_v40, 2  ;;  %v1173_v59 = vperm.slane %v1042_v40, 0  ;;  %v1176_v60 = vperm.slane %v1042_v40, 3  ;;  %v1174_v62 = vperm.slane %v1042_v40, 1  ;;  %v1686_v40 = vld [vmem:[#allocation14 + $0xf0] sm:$0xff] }
 0x1db   : > { %1242 = vmatmul.f32.vlgmr.msra.gmra.mxu2 %v1175_v58  ;;  %1202 = vmatmul.f32.vlgmr.msra.gmra.mxu0 %v1173_v59 }
 0x1dc   : > { %1262 = vmatmul.f32.vlgmr.msra.gmra.mxu3 %v1176_v60  ;;  %1222 = vmatmul.f32.vlgmr.msra.gmra.mxu1 %v1174_v62 }
 0x1dd   : > { %1689 = vmatpush.msra.mxu0 %v1671_v47  ;;  %1709 = vmatpush.msra.mxu1 %v1687_v53 }
 0x1df   : > { %1690 = vmatpush.msra.mxu0 %v1670_v48  ;;  %1710 = vmatpush.msra.mxu1 %v1686_v40  ;;  %v1679_v40 = vld [vmem:[#allocation14 + $0xb8] sm:$0xff] }
 0x1e1   : > { %1691 = vmatpush.msra.mxu0 %v1669_v57 }
 0x1e3   : > { %1322 = vmatmul.f32.vlgmr.msrb.gmra.mxu2 %v1175_v58  ;;  %1282 = vmatmul.f32.vlgmr.msrb.gmra.mxu0 %v1173_v59 }
 0x1e4   : > { %1342 = vmatmul.f32.vlgmr.msrb.gmra.mxu3 %v1176_v60  ;;  %1302 = vmatmul.f32.vlgmr.msrb.gmra.mxu1 %v1174_v62  ;;  %v1685_v62 = vld [vmem:[#allocation14 + $0xe8] sm:$0xff] }
 0x1e5   : > { %1711 = vmatpush.msra.mxu1 %v1685_v62 }
 0x258   : > { %v1203_v1 = vpop.f32.mrf.mxu0 }
 0x259   : > { %v1204_v2 = vadd.f32 %v1203_v1, %v1182_v0  ;;  %v1223_v46 = vpop.f32.mrf.mxu1  ;;  %v1668_v1 = vld [vmem:[#allocation14 + $0x60] sm:$0xff] }
 0x25a   : > { %1692 = vmatpush.msra.mxu0 %v1668_v1 }
 0x25b   : > { %v1224_v3 = vadd.f32 %v1223_v46, %v1204_v2 }
 0x25e   : > { %v1243_v5 = vpop.f32.mrf.mxu2 }
 0x25f   : > { %v1244_v6 = vadd.f32 %v1243_v5, %v1224_v3  ;;  %v1263_v7 = vpop.f32.mrf.mxu3 }
 0x260   : > { %v1283_v8 = vpop.f32.mrf.mxu0 }
 0x261   : > { %v3449_v9 = vadd.f32 %v1263_v7, %v1244_v6  ;;  %v1284_v10 = vadd.f32 %v1283_v8, %v1183_v4  ;;  %v1303_v11 = vpop.f32.mrf.mxu1  ;;  %v1684_v4 = vld [vmem:[#allocation14 + $0xe0] sm:$0xff]  ;;  %v1667_v8 = vld [vmem:[#allocation14 + $0x58] sm:$0xff] }
 0x262   : > { %1712 = vmatpush.msra.mxu1 %v1684_v4  ;;  %1693 = vmatpush.msra.mxu0 %v1667_v8  ;;  %v1678_v4 = vld [vmem:[#allocation14 + $0xb0] sm:$0xff] }
 0x263   : > { %v1349_v13 = vand.u32 2139095040, %v3449_v9  ;;  %v1304_v14 = vadd.f32 %v1303_v11, %v1284_v10  ;;  %v1346_v18 = vand.u32 2147483647, %v3449_v9  ;;  %v1683_v11 = vld [vmem:[#allocation14 + $0xd8] sm:$0xff] }
 0x264   : > { %1713 = vmatpush.msra.mxu1 %v1683_v11 }
 0x265   : > { %v1350_v15 = vshrl.u32 %v1349_v13, 23  ;;  %v1353_v27 = vand.u32 8388607, %v1346_v18 }
 0x266   : > { %v1323_v16 = vpop.f32.mrf.mxu2 }
 0x267   : > { %v2384_v19 = vadd.s32 4294967169, %v1350_v15  ;;  %v1324_v20 = vadd.f32 %v1323_v16, %v1304_v14  ;;  %v1343_v21 = vpop.f32.mrf.mxu3  ;;  %v1354_v33 = vor.u32 8388608, %v1353_v27 }
 0x269   : > { %v1356_v23 = vadd.s32 1, %v2384_v19  ;;  %v3453_v25 = vadd.f32 %v1343_v21, %v1324_v20  ;;  %v3474_v60 = vshll.u32 %v1354_v33, 8  ;;  %v1666_v19 = vld [vmem:[#allocation14 + $0x50] sm:$0xff] }
 0x26a   : > { %1694 = vmatpush.msra.mxu0 %v1666_v19 }
 0x26b   : > { %vm1357_vm7 = vcmp.gt.s32.totalorder %v1356_v23, 0  ;;  %v1501_v29 = vand.u32 2147483647, %v3453_v25  ;;  %v1504_v31 = vand.u32 2139095040, %v3453_v25  ;;  %v3496_v14 = vand.u32 65535, %v3474_v60 }
 0x26c   : > { %v1358_v61 = vsel %vm1357_vm7, %v1356_v23, 0 }
 0x26d   : > { %v1360_v32 = vand.u32 31, %v1358_v61  ;;  %v1505_v35 = vshrl.u32 %v1504_v31, 23  ;;  %v3459_v37 = vshrl.u32 %v1358_v61, 5  ;;  %v1508_v42 = vand.u32 8388607, %v1501_v29  ;;  %v1682_v61 = vld [vmem:[#allocation14 + $0xd0] sm:$0xff] }
 0x26e   : > { %1714 = vmatpush.msra.mxu1 %v1682_v61 }
 0x26f   : > { %v1361_v34 = vsub.s32 32, %v1360_v32  ;;  %v1363_v38 = vshll.u32 %v2959_v22, %v1360_v32  ;;  %v1366_v41 = vshll.u32 %v2960_v24, %v1360_v32  ;;  %v1369_v39 = vshll.u32 %v2961_v26, %v1360_v32 }
 0x270   : > { %v1372_v49 = vshll.u32 %v2962_v28, %v1360_v32  ;;  %v1375_v51 = vshll.u32 %v2963_v30, %v1360_v32  ;;  %v2387_v56 = vadd.s32 4294967169, %v1505_v35  ;;  %vm1378_vm8 = vcmp.lt.s32.totalorder %v3459_v37, 1  ;;  %v1665_v32 = vld [vmem:[#allocation14 + $0x48] sm:$0xff] }
 0x271   : > { %v1364_v43 = vshrl.u32 %v2960_v24, %v1361_v34  ;;  %v1367_v44 = vshrl.u32 %v2961_v26, %v1361_v34  ;;  %v1370_v45 = vshrl.u32 %v2962_v28, %v1361_v34  ;;  %v1373_v50 = vshrl.u32 %v2963_v30, %v1361_v34  ;;  %1695 = vmatpush.msra.mxu0 %v1665_v32 }
 0x272   : > { %v1376_v52 = vshrl.u32 %v2964_v36, %v1361_v34  ;;  %vm1380_vm9 = vcmp.lt.s32.totalorder %v3459_v37, 3  ;;  %vm1381_vm10 = vcmp.lt.s32.totalorder %v3459_v37, 4  ;;  %v1509_v0 = vor.u32 8388608, %v1508_v42 }
 0x273   : > { %v1365_v17 = vor.u32 %v1364_v43, %v1363_v38  ;;  %v1368_v54 = vor.u32 %v1367_v44, %v1366_v41  ;;  %v1371_v55 = vor.u32 %v1370_v45, %v1369_v39  ;;  %v1374_v58 = vor.u32 %v1373_v50, %v1372_v49  ;;  %v1681_v38 = vld [vmem:[#allocation14 + $0xc8] sm:$0xff]  ;;  %v1664_v39 = vld [vmem:[#allocation14 + $0x40] sm:$0xff] }
 0x274   : > { %v1377_v59 = vor.u32 %v1376_v52, %v1375_v51  ;;  %v1511_v3 = vadd.s32 1, %v2387_v56  ;;  %vm1379_vm11 = vcmp.lt.s32.totalorder %v3459_v37, 2  ;;  %v1362_v20 = vshrl.u32 %v2959_v22, %v1361_v34  ;;  %v1680_v50 = vld [vmem:[#allocation14 + $0xc0] sm:$0xff]  ;;  %1715 = vmatpush.msra.mxu1 %v1681_v38  ;;  %1696 = vmatpush.msra.mxu0 %v1664_v39  ;;  %v1659_v39 = vld [vmem:[#allocation14 + $0x18] sm:$0xff] }
 0x275   : > { %v1390_v63 = vsel %vm1378_vm8, %v1368_v54, %v1371_v55  ;;  %v1387_v2 = vsel %vm1381_vm10, %v1374_v58, 920167782  ;;  %v1386_v5 = vsel %vm1378_vm8, %v1365_v17, %v1368_v54  ;;  %v1383_v13 = vsel %vm1381_vm10, %v1371_v55, 2102212464 }
 0x276   : > { %v1391_v46 = vsel %vm1381_vm10, %v1377_v59, 1326507024  ;;  %v1388_v6 = vsel %vm1380_vm9, %v1371_v55, %v1387_v2  ;;  %vm1512_vm12 = vcmp.gt.s32.totalorder %v1511_v3, 0  ;;  %v3503_v27 = vshll.u32 %v1509_v0, 8  ;;  %v1662_v0 = vld [vmem:[#allocation14 + $0x30] sm:$0xff]  ;;  %1716 = vmatpush.msra.mxu1 %v1680_v50 }
 0x277   : > { %v1392_v7 = vsel %vm1380_vm9, %v1374_v58, %v1391_v46  ;;  %v3501_v21 = vsel %vm1379_vm11, %v1386_v5, %v1388_v6  ;;  %v1513_v23 = vsel %vm1512_vm12, %v1511_v3, 0  ;;  %v3510_v33 = vsel %vm1378_vm8, %v1362_v20, %v1365_v17  ;;  %v1663_v17 = vld [vmem:[#allocation14 + $0x38] sm:$0xff] }
 0x278   : > { %v1393_v10 = vsel %vm1379_vm11, %v1390_v63, %v1392_v7  ;;  %v3514_v34 = vsel %vm1380_vm9, %v1368_v54, %v1383_v13  ;;  %v3517_v35 = vshrl.u32 %v3474_v60, 16  ;;  %v1419_v43 = vand.u32 65535, %v3501_v21  ;;  %1697 = vmatpush.msra.mxu0 %v1663_v17  ;;  %1717 = vmatpush.msra.mxu1 %v1679_v40 }
 0x279   : > { %v1397_v15 = vand.u32 65535, %v1393_v10  ;;  %v1398_v16 = vshrl.u32 %v1393_v10, 16  ;;  %v1515_v44 = vand.u32 31, %v1513_v23  ;;  %v1420_v47 = vshrl.u32 %v3501_v21, 16  ;;  %v1661_v10 = vld [vmem:[#allocation14 + $0x28] sm:$0xff]  ;;  %v1656_v21 = vld [vmem:[#allocation14] sm:$0xff] }
 0x27a   : > { %v3527_v48 = vand.u32 65535, %v3503_v27  ;;  %v3530_v49 = vshrl.u32 %v3503_v27, 16  ;;  %v3533_v52 = vshrl.u32 %v1513_v23, 5  ;;  %1698 = vmatpush.msra.mxu0 %v1662_v0  ;;  %v1660_v23 = vld [vmem:[#allocation14 + $0x20] sm:$0xff]  ;;  %1718 = vmatpush.msra.mxu1 %v1678_v4  ;;  %v1657_v4 = vld [vmem:[#allocation14 + $0x8] sm:$0xff] }
 0x27b   : > { %v3506_v31 = vmul.u32 %v1398_v16, %v3496_v14  ;;  %v1399_v41 = vmul.u32 %v1397_v15, %v3496_v14  ;;  %v3523_v45 = vmul.u32 %v1397_v15, %v3517_v35  ;;  %v1402_v51 = vmul.u32 %v1398_v16, %v3517_v35  ;;  %v1677_v16 = vld [vmem:[#allocation14 + $0xa8] sm:$0xff] }
 0x27c   : > { %v3535_v53 = vsub.s32 32, %v1515_v44  ;;  %v1518_v56 = vshll.u32 %v2959_v22, %v1515_v44  ;;  %v1521_v57 = vshll.u32 %v2960_v24, %v1515_v44  ;;  %v1524_v62 = vshll.u32 %v2961_v26, %v1515_v44  ;;  %1699 = vmatpush.msra.mxu0 %v1661_v10  ;;  %1719 = vmatpush.msra.mxu1 %v1677_v16 }
 0x27d   : > { %v1403_v42 = vshll.u32 %v3506_v31, 16  ;;  %v1527_v63 = vshll.u32 %v2962_v28, %v1515_v44  ;;  %v1530_v46 = vshll.u32 %v2963_v30, %v1515_v44  ;;  %v1405_v5 = vshll.u32 %v3523_v45, 16 }
 0x27e   : > { %v1519_v58 = vshrl.u32 %v2960_v24, %v3535_v53  ;;  %v1522_v59 = vshrl.u32 %v2961_v26, %v3535_v53  ;;  %v1525_v1 = vshrl.u32 %v2962_v28, %v3535_v53  ;;  %v1528_v2 = vshrl.u32 %v2963_v30, %v3535_v53  ;;  %1700 = vmatpush.msra.mxu0 %v1660_v23 }
 0x27f   : > { %vm1407_vm13 = vc.u32 %v1399_v41, %v1403_v42  ;;  %v1409_v55 = vadd.s32 %v1403_v42, %v1399_v41  ;;  %v1531_v3 = vshrl.u32 %v2964_v36, %v3535_v53  ;;  %vm1533_vm14 = vcmp.lt.s32.totalorder %v3533_v52, 1  ;;  %v1676_v41 = vld [vmem:[#allocation14 + $0xa0] sm:$0xff] }
 0x280   : > { %v1408_v54 = vsel %vm1407_vm13, 1, %v2965_v12  ;;  %v3554_v7 = vor.u32 %v1519_v58, %v1518_v56  ;;  %v3556_v8 = vor.u32 %v1522_v59, %v1521_v57  ;;  %v3558_v11 = vor.u32 %v1525_v1, %v1524_v62  ;;  %v1658_v58 = vld [vmem:[#allocation14 + $0x10] sm:$0xff]  ;;  %1720 = vmatpush.msra.mxu1 %v1676_v41  ;;  %1701 = vmatpush.msra.mxu0 %v1659_v39 }
 0x281   : > { %v1410_v6 = vadd.s32 %v1408_v54, %v1402_v51  ;;  %v1529_v13 = vor.u32 %v1528_v2, %v1527_v63  ;;  %v1532_v15 = vor.u32 %v1531_v3, %v1530_v46  ;;  %v3564_v19 = vmul.u32 %v1420_v47, %v3496_v14 }
 0x282   : > { %vm1536_vm15 = vcmp.lt.s32.totalorder %v3533_v52, 4  ;;  %v1541_v20 = vsel %vm1533_vm14, %v3554_v7, %v3556_v8  ;;  %vm1411_vm0 = vc.u32 %v1409_v55, %v1405_v5  ;;  %vm1535_vm1 = vcmp.lt.s32.totalorder %v3533_v52, 3  ;;  %1702 = vmatpush.msra.mxu0 %v1658_v58 }
 0x283   : > { %v1542_v61 = vsel %vm1536_vm15, %v1529_v13, 920167782  ;;  %v1545_v32 = vsel %vm1533_vm14, %v3556_v8, %v3558_v11  ;;  %v1546_v38 = vsel %vm1536_vm15, %v1532_v15, 1326507024  ;;  %vm1534_vm2 = vcmp.lt.s32.totalorder %v3533_v52, 2 }
 0x284   : > { %v1543_v42 = vsel %vm1535_vm1, %v3558_v11, %v1542_v61  ;;  %v1547_v44 = vsel %vm1535_vm1, %v1529_v13, %v1546_v38  ;;  %v1412_v50 = vsel %vm1411_vm0, 1, %v2965_v12  ;;  %v3590_v51 = vmul.u32 %v1419_v43, %v3517_v35  ;;  %1703 = vmatpush.msra.mxu0 %v1657_v4 }
 0x285   : > { %v1544_v17 = vsel %vm1534_vm2, %v1541_v20, %v1543_v42  ;;  %v1548_v54 = vsel %vm1534_vm2, %v1545_v32, %v1547_v44  ;;  %v1414_v55 = vadd.s32 %v1412_v50, %v1410_v6  ;;  %v1425_v59 = vshll.u32 %v3564_v19, 16 }
 0x286   : > { %v1552_v56 = vand.u32 65535, %v1548_v54  ;;  %v1553_v57 = vshrl.u32 %v1548_v54, 16  ;;  %v1575_v40 = vshrl.u32 %v1544_v17, 16  ;;  %v3601_v62 = vsel %vm1379_vm11, %v3510_v33, %v3514_v34  ;;  %1704 = vmatpush.msra.mxu0 %v1656_v21 }
 0x287   : > { %v1574_v63 = vand.u32 65535, %v1544_v17  ;;  %v1404_v0 = vshrl.u32 %v3506_v31, 16  ;;  %v1421_v1 = vmul.u32 %v1419_v43, %v3496_v14  ;;  %v1424_v2 = vmul.u32 %v1420_v47, %v3517_v35 }
 0x288   : > { %v1555_v46 = vmul.u32 %v1553_v57, %v3527_v48  ;;  %v1556_v3 = vmul.u32 %v1552_v56, %v3530_v49  ;;  %v1577_v37 = vmul.u32 %v1575_v40, %v3527_v48  ;;  %v1406_v33 = vshrl.u32 %v3523_v45, 16 }
 0x289   : > { %v1415_v34 = vadd.s32 %v1414_v55, %v1404_v0  ;;  %v1427_v31 = vshll.u32 %v3590_v51, 16  ;;  %v1554_v5 = vmul.u32 %v1552_v56, %v3527_v48  ;;  %v1557_v14 = vmul.u32 %v1553_v57, %v3530_v49 }
 0x28a   : > { %v1558_v43 = vshll.u32 %v1555_v46, 16  ;;  %vm1429_vm3 = vc.u32 %v1421_v1, %v1425_v59  ;;  %v1560_v35 = vshll.u32 %v1556_v3, 16  ;;  %v1578_v47 = vmul.u32 %v1574_v63, %v3530_v49 }
 0x28b   : > { %v1430_v6 = vsel %vm1429_vm3, 1, %v2965_v12  ;;  %v1431_v10 = vadd.s32 %v1425_v59, %v1421_v1  ;;  %v1580_v15 = vshll.u32 %v1577_v37, 16  ;;  %v1576_v20 = vmul.u32 %v1574_v63, %v3527_v48 }
 0x28c   : > { %vm1562_vm4 = vc.u32 %v1554_v5, %v1558_v43  ;;  %v1564_v13 = vadd.s32 %v1558_v43, %v1554_v5  ;;  %v1432_v45 = vadd.s32 %v1430_v6, %v1424_v2  ;;  %v1426_v23 = vshrl.u32 %v3564_v19, 16 }
 0x28d   : > { %v1563_v16 = vsel %vm1562_vm4, 1, %v2965_v12  ;;  %vm1433_vm5 = vc.u32 %v1431_v10, %v1427_v31  ;;  %v1579_v32 = vmul.u32 %v1575_v40, %v3530_v49  ;;  %v1416_v41 = vadd.s32 %v1415_v34, %v1406_v33 }
 0x28e   : > { %v1565_v61 = vadd.s32 %v1563_v16, %v1557_v14  ;;  %v1434_v38 = vsel %vm1433_vm5, 1, %v2965_v12  ;;  %vm1566_vm6 = vc.u32 %v1564_v13, %v1560_v35  ;;  %v1559_v44 = vshrl.u32 %v1555_v46, 16 }
 0x28f   : > { %v1436_v42 = vadd.s32 %v1434_v38, %v1432_v45  ;;  %v1567_v39 = vsel %vm1566_vm6, 1, %v2965_v12  ;;  %v1582_v17 = vshll.u32 %v1578_v47, 16  ;;  %vm1584_vm7 = vc.u32 %v1576_v20, %v1580_v15 }
 0x290   : > { %v1569_v50 = vadd.s32 %v1567_v39, %v1565_v61  ;;  %v1586_v54 = vadd.s32 %v1580_v15, %v1576_v20  ;;  %v1538_v48 = vsel %vm1536_vm15, %v3558_v11, 2102212464  ;;  %v1428_v19 = vshrl.u32 %v3590_v51, 16 }
 0x291   : > { %v1437_v55 = vadd.s32 %v1436_v42, %v1426_v23  ;;  %v1585_v49 = vsel %vm1584_vm7, 1, %v2965_v12  ;;  %v1435_v56 = vadd.s32 %v1431_v10, %v1427_v31  ;;  %v1517_v58 = vshrl.u32 %v2959_v22, %v3535_v53 }
 0x292   : > { %v1570_v57 = vadd.s32 %v1569_v50, %v1559_v44  ;;  %v1587_v40 = vadd.s32 %v1585_v49, %v1579_v32  ;;  %vm1588_vm8 = vc.u32 %v1586_v54, %v1582_v17  ;;  %v1561_v63 = vshrl.u32 %v1556_v3, 16  ;;  %v1675_v49 = vld [vmem:[#allocation14 + $0x98] sm:$0xff] }
 0x293   : > { %v1438_v59 = vadd.s32 %v1437_v55, %v1428_v19  ;;  %v1589_v0 = vsel %vm1588_vm8, 1, %v2965_v12  ;;  %vm1441_vm9 = vc.u32 %v1416_v41, %v1435_v56  ;;  %v1581_v1 = vshrl.u32 %v1577_v37, 16  ;;  %1721 = vmatpush.msra.mxu1 %v1675_v49 }
 0x294   : > { %v1591_v2 = vadd.s32 %v1589_v0, %v1587_v40  ;;  %v1537_v11 = vsel %vm1533_vm14, %v1517_v58, %v3554_v7  ;;  %v1539_v51 = vsel %vm1535_vm1, %v3556_v8, %v1538_v48  ;;  %v1571_v4 = vadd.s32 %v1570_v57, %v1561_v63  ;;  %v1674_v57 = vld [vmem:[#allocation14 + $0x90] sm:$0xff]  ;;  %v1673_v0 = vld [vmem:[#allocation14 + $0x88] sm:$0xff] }
 0x295   : > { %v1442_v46 = vadd.s32 1, %v1438_v59  ;;  %v1439_v53 = vmul.u32 %v3474_v60, %v3601_v62  ;;  %v1583_v33 = vshrl.u32 %v1578_v47, 16  ;;  %v1590_v31 = vadd.s32 %v1586_v54, %v1582_v17  ;;  %1722 = vmatpush.msra.mxu1 %v1674_v57 }
 0x296   : > { %v1592_v3 = vadd.s32 %v1591_v2, %v1581_v1  ;;  %v1540_v37 = vsel %vm1534_vm2, %v1537_v11, %v1539_v51  ;;  %v1440_v38 = vadd.s32 %v1435_v56, %v1416_v41  ;;  %v1672_v51 = vld [vmem:[#allocation14 + $0x80] sm:$0xff]  ;;  %vm1348_vm15 = vcmp.lt.s32.totalorder %v3449_v9, 0 }
 0x297   : > { %v1443_v34 = vsel %vm1441_vm9, %v1442_v46, %v1438_v59  ;;  %vm1596_vm10 = vc.u32 %v1571_v4, %v1590_v31  ;;  %v1594_v21 = vmul.u32 %v3503_v27, %v1540_v37  ;;  %v1595_v40 = vadd.s32 %v1590_v31, %v1571_v4  ;;  %1723 = vmatpush.msra.mxu1 %v1673_v0 }
 0x298   : > { %v1444_v5 = vadd.s32 %v1443_v34, %v1439_v53  ;;  %v1593_v14 = vadd.s32 %v1592_v3, %v1583_v33  ;;  %vm3653_vm0 = vcmp.le.f32.partialorder %v1346_v18, 0.7853982  ;;  %vm1503_vm1 = vcmp.lt.s32.totalorder %v3453_v25, 0  ;;  %v1897_v18 = vld [vmem:[#allocation17 + $0x68] sm:$0xff] }
 0x299   : > { %1724 = vmatpush.msra.mxu1 %v1672_v51  ;;  %vm3665_vm2 = vcmp.le.f32.partialorder %v1501_v29, 0.7853982  ;;  %vm1489_vm6 = vweird.f32 %v3449_v9 }
 0x29a   : > { %v1445_v7 = vadd.s32 536870912, %v1444_v5  ;;  %v1597_v43 = vadd.s32 1, %v1593_v14 }
 0x29c   : > { %v3644_v8 = vshrl.u32 %v1445_v7, 30  ;;  %v1598_v35 = vsel %vm1596_vm10, %v1597_v43, %v1593_v14  ;;  %vm1644_vm10 = vweird.f32 %v3453_v25 }
 0x29d   : > { %v1599_v6 = vadd.s32 %v1598_v35, %v1594_v21 }
 0x29e   : > { %v1447_v60 = vshll.u32 %v3644_v8, 30  ;;  %v1470_v14 = vsub.s32 4, %v3644_v8 }
 0x29f   : > { %v1600_v62 = vadd.s32 536870912, %v1599_v6 }
 0x2a0   : > { %v1448_v47 = vsub.s32 %v1444_v5, %v1447_v60 }
 0x2a1   : > { %v3647_v10 = vshrl.u32 %v1600_v62, 30  ;;  %v1471_v62 = vsel %vm1348_vm15, %v1470_v14, %v3644_v8 }
 0x2a2   : > { %vm1449_vm11 = vcmp.lt.s32.totalorder %v1448_v47, 0  ;;  %v1450_v52 = vsub.s32 0, %v1448_v47  ;;  %v1473_v8 = vsel %vm3653_vm0, 0, %v1471_v62 }
 0x2a3   : > { %v1602_v13 = vshll.u32 %v3647_v10, 30 }
 0x2a4   : > { %v1451_v45 = vsel %vm1449_vm11, %v1450_v52, %v1448_v47 }
 0x2a5   : > { %v1452_v15 = vclz %v1451_v45  ;;  %v1603_v16 = vsub.s32 %v1599_v6, %v1602_v13  ;;  %v1625_v45 = vsub.s32 4, %v3647_v10 }
 0x2a7   : > { %v2385_v20 = vadd.s32 4294967294, %v1452_v15  ;;  %vm1604_vm12 = vcmp.lt.s32.totalorder %v1603_v16, 0  ;;  %v1605_v27 = vsub.s32 0, %v1603_v16 }
 0x2a9   : > { %vm2386_vm13 = vcmp.lt.s32.totalorder %v2385_v20, 0  ;;  %v1606_v23 = vsel %vm1604_vm12, %v1605_v27, %v1603_v16 }
 0x2aa   : > { %v1455_v61 = vsel %vm2386_vm13, 0, %v2385_v20  ;;  %v1607_v32 = vclz %v1606_v23 }
 0x2ab   : > { %v1456_v42 = vsub.s32 32, %v1455_v61  ;;  %v1460_v44 = vsub.s32 4294967266, %v1455_v61  ;;  %v1457_v50 = vshll.u32 %v1448_v47, %v1455_v61 }
 0x2ac   : > { %v2388_v39 = vadd.s32 4294967294, %v1607_v32 }
 0x2ad   : > { %v1458_v17 = vshrl.u32 %v1440_v38, %v1456_v42  ;;  %v1461_v54 = vadd.s32 127, %v1460_v44  ;;  %v1626_v38 = vsel %vm1503_vm1, %v1625_v45, %v3647_v10  ;;  %v1490_v42 = vadd.s32 3, %v1473_v8  ;;  %v1893_v8 = vld [vmem:[#allocation17 + $0x48] sm:$0xff] }
 0x2ae   : > { %vm2389_vm14 = vcmp.lt.s32.totalorder %v2388_v39, 0 }
 0x2af   : > { %v1459_v48 = vor.u32 %v1458_v17, %v1457_v50  ;;  %v1462_v19 = vshll.u32 %v1461_v54, 23  ;;  %v1610_v55 = vsel %vm2389_vm14, 0, %v2388_v39  ;;  %v1628_v54 = vsel %vm3665_vm2, 0, %v1626_v38 }
 0x2b0   : > { %v1611_v58 = vsub.s32 32, %v1610_v55  ;;  %v1615_v59 = vsub.s32 4294967266, %v1610_v55  ;;  %v1612_v1 = vshll.u32 %v1603_v16, %v1610_v55  ;;  %v1491_v57 = vand.u32 3, %v1490_v42 }
 0x2b1   : > { %v1463_v63 = vor.u32 4788187, %v1462_v19  ;;  %v1466_v11 = vcvt.s32.f32 %v1459_v48  ;;  %v1645_v0 = vadd.s32 3, %v1628_v54 }
 0x2b2   : > { %v1613_v41 = vshrl.u32 %v1595_v40, %v1611_v58  ;;  %v1616_v56 = vadd.s32 127, %v1615_v59  ;;  %vm1493_vm3 = vcmp.eq.s32.totalorder %v1491_v57, 0  ;;  %vm1496_vm4 = vcmp.eq.s32.totalorder %v1491_v57, 2 }
 0x2b3   : > { %v1464_v2 = vand.u32 2147483647, %v1463_v63  ;;  %vm1492_vm5 = vcmp.lt.s32.totalorder %v1491_v57, 2 }
 0x2b4   : > { %v1614_v46 = vor.u32 %v1613_v41, %v1612_v1  ;;  %v1617_v53 = vshll.u32 %v1616_v56, 23 }
 0x2b5   : > { %v1467_v33 = vmul.f32 %v1466_v11, %v1464_v2 }
 0x2b6   : > { %v1618_v3 = vor.u32 4788187, %v1617_v53  ;;  %v1621_v31 = vcvt.s32.f32 %v1614_v46  ;;  %v1646_v46 = vand.u32 3, %v1645_v0  ;;  %v1889_v0 = vld [vmem:[#allocation17 + $0x28] sm:$0xff] }
 0x2b7   : > { %v1468_v34 = vxor.u32 2147483648, %v1467_v33 }
 0x2b8   : > { %v1619_v4 = vand.u32 2147483647, %v1618_v3  ;;  %vm1648_vm7 = vcmp.eq.s32.totalorder %v1646_v46, 0  ;;  %vm1651_vm8 = vcmp.eq.s32.totalorder %v1646_v46, 2  ;;  %vm1647_vm9 = vcmp.lt.s32.totalorder %v1646_v46, 2 }
 0x2b9   : > { %v1469_v5 = vsel %vm1348_vm15, %v1468_v34, %v1467_v33 }
 0x2ba   : > { %v1472_v7 = vsel %vm3653_vm0, %v3449_v9, %v1469_v5  ;;  %v1622_v43 = vmul.f32 %v1621_v31, %v1619_v4 }
 0x2bb   : > { %v1474_v21 = vmul.f32 %v1472_v7, %v1472_v7 }
 0x2bc   : > { %v1623_v35 = vxor.u32 2147483648, %v1622_v43 }
 0x2bd   : > { %v1475_v6 = vmul.f32 -0.001358992, %v1474_v21  ;;  %v1482_v60 = vmul.f32 -0.00019511016, %v1474_v21 }
 0x2be   : > { %v1624_v47 = vsel %vm1503_vm1, %v1623_v35, %v1622_v43 }
 0x2bf   : > { %v1476_v52 = vadd.f32 0.041655596, %v1475_v6  ;;  %v1483_v13 = vadd.f32 0.008332121, %v1482_v60  ;;  %v1627_v15 = vsel %vm3665_vm2, %v3453_v25, %v1624_v47  ;;  %v1899_v6 = vld [vmem:[#allocation17 + $0x78] sm:$0xff]  ;;  %v1898_v60 = vld [vmem:[#allocation17 + $0x70] sm:$0xff] }
 0x2c0   : > { %v1629_v16 = vmul.f32 %v1627_v15, %v1627_v15  ;;  %1901 = vmatpush.msra.mxu2 %v1899_v6 }
 0x2c1   : > { %v1477_v20 = vmul.f32 %v1476_v52, %v1474_v21  ;;  %v1484_v29 = vmul.f32 %v1483_v13, %v1474_v21  ;;  %v1896_v52 = vld [vmem:[#allocation17 + $0x60] sm:$0xff]  ;;  %v1895_v13 = vld [vmem:[#allocation17 + $0x58] sm:$0xff] }
 0x2c2   : > { %v1630_v27 = vmul.f32 -0.001358992, %v1629_v16  ;;  %v1637_v23 = vmul.f32 -0.00019511016, %v1629_v16  ;;  %1902 = vmatpush.msra.mxu2 %v1898_v60  ;;  %v1885_v60 = vld [vmem:[#allocation17 + $0x8] sm:$0xff] }
 0x2c3   : > { %v1478_v61 = vadd.f32 -0.4999988, %v1477_v20  ;;  %v1485_v32 = vadd.f32 -0.16666654, %v1484_v29 }
 0x2c4   : > { %v1631_v44 = vadd.f32 0.041655596, %v1630_v27  ;;  %v1638_v39 = vadd.f32 0.008332121, %v1637_v23  ;;  %1903 = vmatpush.msra.mxu2 %v1897_v18  ;;  %v1892_v23 = vld [vmem:[#allocation17 + $0x40] sm:$0xff] }
 0x2c5   : > { %v1479_v50 = vmul.f32 %v1478_v61, %v1474_v21  ;;  %v1486_v17 = vmul.f32 %v1485_v32, %v1474_v21  ;;  %v1891_v32 = vld [vmem:[#allocation17 + $0x38] sm:$0xff] }
 0x2c6   : > { %v1632_v48 = vmul.f32 %v1631_v44, %v1629_v16  ;;  %v1639_v19 = vmul.f32 %v1638_v39, %v1629_v16  ;;  %1904 = vmatpush.msra.mxu2 %v1896_v52 }
 0x2c7   : > { %v1480_v55 = vadd.f32 1.0, %v1479_v50  ;;  %v1487_v49 = vadd.f32 1.0, %v1486_v17 }
 0x2c8   : > { %v1633_v40 = vadd.f32 -0.4999988, %v1632_v48  ;;  %v1640_v58 = vadd.f32 -0.16666654, %v1639_v19  ;;  %1905 = vmatpush.msra.mxu2 %v1895_v13  ;;  %v1890_v19 = vld [vmem:[#allocation17 + $0x30] sm:$0xff] }
 0x2c9   : > { %v1488_v59 = vmul.f32 %v1487_v49, %v1472_v7  ;;  %v1497_v63 = vxor.u32 2147483648, %v1480_v55  ;;  %v1688_v7 = vld [vmem:[#allocation15] sm:$0x1] }
 0x2ca   : > { %v1634_v1 = vmul.f32 %v1633_v40, %v1629_v16  ;;  %v1641_v10 = vmul.f32 %v1640_v58, %v1629_v16  ;;  %v1894_v16 = vld [vmem:[#allocation17 + $0x50] sm:$0xff] }
 0x2cb   : > { %v1494_v41 = vxor.u32 2147483648, %v1488_v59  ;;  %v1498_v51 = vsel %vm1496_vm4, %v1497_v63, %v1488_v59  ;;  %1906 = vmatpush.msra.mxu2 %v1894_v16 }
 0x2cc   : > { %v1635_v56 = vadd.f32 1.0, %v1634_v1  ;;  %v1642_v2 = vadd.f32 1.0, %v1641_v10 }
 0x2cd   : > { %v1495_v11 = vsel %vm1493_vm3, %v1480_v55, %v1494_v41  ;;  %1907 = vmatpush.msra.mxu2 %v1893_v8 }
 0x2ce   : > { %v1499_v53 = vsel %vm1492_vm5, %v1495_v11, %v1498_v51  ;;  %v1643_v33 = vmul.f32 %v1642_v2, %v1627_v15  ;;  %v1652_v3 = vxor.u32 2147483648, %v1635_v56  ;;  %v1888_v11 = vld [vmem:[#allocation17 + $0x20] sm:$0xff] }
 0x2cf   : > { %v1500_v34 = vsel %vm1489_vm6, nan, %v1499_v53  ;;  %1908 = vmatpush.msra.mxu2 %v1892_v23 }
 0x2d0   : > { %1705 = vmatmul.f32.vlgmr.msra.gmra.mxu0 %v1500_v34  ;;  %v1649_v4 = vxor.u32 2147483648, %v1643_v33  ;;  %v1653_v37 = vsel %vm1651_vm8, %v1652_v3, %v1643_v33  ;;  %v1887_v3 = vld [vmem:[#allocation17 + $0x18] sm:$0xff] }
 0x2d1   : > { %1909 = vmatpush.msra.mxu2 %v1891_v32 }
 0x2d2   : > { %v1650_v31 = vsel %vm1648_vm7, %v1635_v56, %v1649_v4 }
 0x2d3   : > { %v1654_v5 = vsel %vm1647_vm9, %v1650_v31, %v1653_v37  ;;  %1910 = vmatpush.msra.mxu2 %v1890_v19 }
 0x2d4   : > { %v1655_v14 = vsel %vm1644_vm10, nan, %v1654_v5 }
 0x2d5   : > { %1725 = vmatmul.f32.vlgmr.msra.gmra.mxu1 %v1655_v14  ;;  %1911 = vmatpush.msra.mxu2 %v1889_v0 }
 0x2d7   : > { %1912 = vmatpush.msra.mxu2 %v1888_v11 }
 0x2d9   : > { %1913 = vmatpush.msra.mxu2 %v1887_v3 }
 0x34d   : > { %v1706_v43 = vpop.f32.mrf.mxu0 }
 0x34e   : > { %v1707_v21 = vadd.f32 %v1706_v43, %v1688_v7 }
 0x352   : > { %v1726_v9 = vpop.f32.mrf.mxu1 }
 0x353   : > { %v3684_v35 = vadd.f32 %v1726_v9, %v1707_v21  ;;  %v1886_v21 = vld [vmem:[#allocation17 + $0x10] sm:$0xff] }
 0x354   : > { %1914 = vmatpush.msra.mxu2 %v1886_v21 }
 0x355   : > { %v1732_v62 = vand.u32 2139095040, %v3684_v35  ;;  %v1729_v45 = vand.u32 2147483647, %v3684_v35  ;;  %vm1731_vm7 = vcmp.lt.s32.totalorder %v3684_v35, 0 }
 0x356   : > { %1915 = vmatpush.msra.mxu2 %v1885_v60 }
 0x357   : > { %v1733_v47 = vshrl.u32 %v1732_v62, 23  ;;  %v1736_v20 = vand.u32 8388607, %v1729_v45  ;;  %vm1730_vm8 = vcmp.le.f32.partialorder %v1729_v45, 0.7853982 }
 0x359   : > { %v2390_v25 = vadd.s32 4294967169, %v1733_v47  ;;  %v1737_v38 = vor.u32 8388608, %v1736_v20 }
 0x35b   : > { %v1739_v15 = vadd.s32 1, %v2390_v25  ;;  %v3714_v41 = vshll.u32 %v1737_v38, 8  ;;  %v1884_v25 = vld [vmem:[#allocation17] sm:$0xff] }
 0x35c   : > { %1916 = vmatpush.msra.mxu2 %v1884_v25 }
 0x35d   : > { %vm1740_vm11 = vcmp.gt.s32.totalorder %v1739_v15, 0  ;;  %v1778_v31 = vand.u32 65535, %v3714_v41  ;;  %v1779_v37 = vshrl.u32 %v3714_v41, 16 }
 0x35e   : > { %v1741_v29 = vsel %vm1740_vm11, %v1739_v15, 0 }
 0x35f   : > { %v1743_v27 = vand.u32 31, %v1741_v29  ;;  %v3692_v42 = vshrl.u32 %v1741_v29, 5 }
 0x361   : > { %v3690_v61 = vsub.s32 32, %v1743_v27  ;;  %v1746_v44 = vshll.u32 %v2959_v22, %v1743_v27  ;;  %v1749_v39 = vshll.u32 %v2960_v24, %v1743_v27  ;;  %v1752_v54 = vshll.u32 %v2961_v26, %v1743_v27 }
 0x362   : > { %v1755_v55 = vshll.u32 %v2962_v28, %v1743_v27  ;;  %v1758_v57 = vshll.u32 %v2963_v30, %v1743_v27  ;;  %vm1761_vm12 = vcmp.lt.s32.totalorder %v3692_v42, 1  ;;  %vm1764_vm13 = vcmp.lt.s32.totalorder %v3692_v42, 4 }
 0x363   : > { %v1747_v50 = vshrl.u32 %v2960_v24, %v3690_v61  ;;  %v1750_v17 = vshrl.u32 %v2961_v26, %v3690_v61  ;;  %v1753_v48 = vshrl.u32 %v2962_v28, %v3690_v61  ;;  %v1756_v49 = vshrl.u32 %v2963_v30, %v3690_v61 }
 0x364   : > { %v1759_v40 = vshrl.u32 %v2964_v36, %v3690_v61  ;;  %vm1763_vm14 = vcmp.lt.s32.totalorder %v3692_v42, 3  ;;  %vm1762_vm15 = vcmp.lt.s32.totalorder %v3692_v42, 2 }
 0x365   : > { %v3709_v58 = vor.u32 %v1747_v50, %v1746_v44  ;;  %v3711_v59 = vor.u32 %v1750_v17, %v1749_v39  ;;  %v1754_v63 = vor.u32 %v1753_v48, %v1752_v54  ;;  %v1757_v1 = vor.u32 %v1756_v49, %v1755_v55 }
 0x366   : > { %v1760_v10 = vor.u32 %v1759_v40, %v1758_v57  ;;  %v1745_v54 = vshrl.u32 %v2959_v22, %v3690_v61 }
 0x367   : > { %v1769_v56 = vsel %vm1761_vm12, %v3709_v58, %v3711_v59  ;;  %v1773_v2 = vsel %vm1761_vm12, %v3711_v59, %v1754_v63  ;;  %v1770_v51 = vsel %vm1764_vm13, %v1757_v1, 920167782  ;;  %v1766_v39 = vsel %vm1764_vm13, %v1754_v63, 2102212464 }
 0x368   : > { %v1774_v46 = vsel %vm1764_vm13, %v1760_v10, 1326507024  ;;  %v1771_v53 = vsel %vm1763_vm14, %v1754_v63, %v1770_v51  ;;  %v1765_v40 = vsel %vm1761_vm12, %v1745_v54, %v3709_v58  ;;  %v1767_v63 = vsel %vm1763_vm14, %v3711_v59, %v1766_v39 }
 0x369   : > { %v1775_v33 = vsel %vm1763_vm14, %v1757_v1, %v1774_v46  ;;  %v1772_v34 = vsel %vm1762_vm15, %v1769_v56, %v1771_v53  ;;  %v1768_v11 = vsel %vm1762_vm15, %v1765_v40, %v1767_v63  ;;  %vm1872_vm12 = vweird.f32 %v3684_v35 }
 0x36a   : > { %v1776_v4 = vsel %vm1762_vm15, %v1773_v2, %v1775_v33  ;;  %v1802_v7 = vand.u32 65535, %v1772_v34  ;;  %v1803_v43 = vshrl.u32 %v1772_v34, 16  ;;  %v1822_v53 = vmul.u32 %v3714_v41, %v1768_v11 }
 0x36b   : > { %v1780_v5 = vand.u32 65535, %v1776_v4  ;;  %v1781_v14 = vshrl.u32 %v1776_v4, 16  ;;  %vm2130_vm13 = vcmask 0  }
 0x36c   : > { %v1805_v62 = vmul.u32 %v1803_v43, %v1778_v31  ;;  %v1806_v18 = vmul.u32 %v1802_v7, %v1779_v37  ;;  %v1804_v15 = vmul.u32 %v1802_v7, %v1778_v31  ;;  %v1807_v29 = vmul.u32 %v1803_v43, %v1779_v37 }
 0x36d   : > { %v1783_v9 = vmul.u32 %v1781_v14, %v1778_v31  ;;  %v1784_v6 = vmul.u32 %v1780_v5, %v1779_v37  ;;  %v1782_v47 = vmul.u32 %v1780_v5, %v1778_v31  ;;  %v1785_v13 = vmul.u32 %v1781_v14, %v1779_v37 }
 0x36e   : > { %v1808_v16 = vshll.u32 %v1805_v62, 16  ;;  %v1810_v23 = vshll.u32 %v1806_v18, 16  ;;  %v1809_v49 = vshrl.u32 %v1805_v62, 16  ;;  %v1811_v10 = vshrl.u32 %v1806_v18, 16 }
 0x36f   : > { %v1786_v52 = vshll.u32 %v1783_v9, 16  ;;  %v1788_v8 = vshll.u32 %v1784_v6, 16  ;;  %v1787_v48 = vshrl.u32 %v1783_v9, 16  ;;  %v1789_v0 = vshrl.u32 %v1784_v6, 16 }
 0x370   : > { %vm1812_vm1 = vc.u32 %v1804_v15, %v1808_v16  ;;  %v1814_v32 = vadd.s32 %v1808_v16, %v1804_v15 }
 0x371   : > { %vm1790_vm0 = vc.u32 %v1782_v47, %v1786_v52  ;;  %v1792_v20 = vadd.s32 %v1786_v52, %v1782_v47  ;;  %v1813_v44 = vsel %vm1812_vm1, 1, %v2965_v12 }
 0x372   : > { %v1791_v27 = vsel %vm1790_vm0, 1, %v2965_v12  ;;  %v1815_v17 = vadd.s32 %v1813_v44, %v1807_v29  ;;  %vm1816_vm3 = vc.u32 %v1814_v32, %v1810_v23  ;;  %v1818_v61 = vadd.s32 %v1814_v32, %v1810_v23 }
 0x373   : > { %v1793_v38 = vadd.s32 %v1791_v27, %v1785_v13  ;;  %vm1794_vm2 = vc.u32 %v1792_v20, %v1788_v8  ;;  %v1817_v55 = vsel %vm1816_vm3, 1, %v2965_v12 }
 0x374   : > { %v1795_v50 = vsel %vm1794_vm2, 1, %v2965_v12  ;;  %v1819_v57 = vadd.s32 %v1817_v55, %v1815_v17 }
 0x375   : > { %v1797_v19 = vadd.s32 %v1795_v50, %v1793_v38 }
 0x376   : > { %v1820_v56 = vadd.s32 %v1819_v57, %v1809_v49 }
 0x377   : > { %v1798_v1 = vadd.s32 %v1797_v19, %v1787_v48 }
 0x378   : > { %v1821_v51 = vadd.s32 %v1820_v56, %v1811_v10 }
 0x379   : > { %v1799_v2 = vadd.s32 %v1798_v1, %v1789_v0 }
 0x37a   : > { %v1825_v46 = vadd.s32 1, %v1821_v51 }
 0x37b   : > { %vm1824_vm4 = vc.u32 %v1799_v2, %v1818_v61  ;;  %v1823_v42 = vadd.s32 %v1818_v61, %v1799_v2  ;;  %v2966_v61 = vmov 192000.0  }
 0x37c   : > { %v1826_v33 = vsel %vm1824_vm4, %v1825_v46, %v1821_v51  ;;  %2551 = vrcp.f32 %v2966_v61  ;;  %v1900_v46 = vld [vmem:[#allocation18] sm:$0x1] }
 0x37d   : > { %v1827_v58 = vadd.s32 %v1826_v33, %v1822_v53 }
 0x37f   : > { %v1828_v3 = vadd.s32 536870912, %v1827_v58 }
 0x381   : > { %v1829_v34 = vshrl.u32 %v1828_v3, 30 }
 0x382   : > { %v2552_v11 = vpop.eup %2551 }
 0x383   : > { %v1830_v4 = vshll.u32 %v1829_v34, 30  ;;  %v1853_v16 = vsub.s32 4, %v1829_v34  ;;  %v1928_v51 = vmul.f32 192000.0, %v2552_v11  ;;  %vm1932_vm14 = vweird.f32 %v2552_v11 }
 0x385   : > { %v1831_v59 = vsub.s32 %v1827_v58, %v1830_v4  ;;  %v1854_v23 = vsel %vm1731_vm7, %v1853_v16, %v1829_v34  ;;  %v1929_v58 = vsub.f32 1.0, %v1928_v51 }
 0x386   : > { %v1856_v44 = vsel %vm1730_vm8, 0, %v1854_v23 }
 0x387   : > { %vm1832_vm5 = vcmp.lt.s32.totalorder %v1831_v59, 0  ;;  %v1833_v31 = vsub.s32 0, %v1831_v59  ;;  %v1873_v48 = vadd.s32 3, %v1856_v44  ;;  %v1930_v3 = vmul.f32 %v2552_v11, %v1929_v58 }
 0x389   : > { %v1834_v37 = vsel %vm1832_vm5, %v1833_v31, %v1831_v59  ;;  %v1874_v57 = vand.u32 3, %v1873_v48  ;;  %v1931_v4 = vadd.f32 %v2552_v11, %v1930_v3 }
 0x38a   : > { %v1835_v5 = vclz %v1834_v37 }
 0x38b   : > { %vm1876_vm9 = vcmp.eq.s32.totalorder %v1874_v57, 0  ;;  %vm1879_vm10 = vcmp.eq.s32.totalorder %v1874_v57, 2  ;;  %vm1875_vm11 = vcmp.lt.s32.totalorder %v1874_v57, 2  ;;  %v1933_v37 = vsel %vm1932_vm14, %v2552_v11, %v1931_v4 }
 0x38c   : > { %v2391_v14 = vadd.s32 4294967294, %v1835_v5 }
 0x38e   : > { %vm2392_vm6 = vcmp.lt.s32.totalorder %v2391_v14, 0 }
 0x38f   : > { %v1838_v7 = vsel %vm2392_vm6, 0, %v2391_v14 }
 0x390   : > { %v1839_v43 = vsub.s32 32, %v1838_v7  ;;  %v1843_v21 = vsub.s32 4294967266, %v1838_v7  ;;  %v1840_v9 = vshll.u32 %v1831_v59, %v1838_v7 }
 0x392   : > { %v1841_v6 = vshrl.u32 %v1823_v42, %v1839_v43  ;;  %v1844_v60 = vadd.s32 127, %v1843_v21 }
 0x394   : > { %v1842_v41 = vor.u32 %v1841_v6, %v1840_v9  ;;  %v1845_v62 = vshll.u32 %v1844_v60, 23 }
 0x396   : > { %v1846_v18 = vor.u32 4788187, %v1845_v62  ;;  %v1849_v52 = vcvt.s32.f32 %v1842_v41 }
 0x398   : > { %v1847_v47 = vand.u32 2147483647, %v1846_v18 }
 0x39a   : > { %v1850_v25 = vmul.f32 %v1849_v52, %v1847_v47 }
 0x39c   : > { %v1851_v13 = vxor.u32 2147483648, %v1850_v25 }
 0x39e   : > { %v1852_v15 = vsel %vm1731_vm7, %v1851_v13, %v1850_v25 }
 0x39f   : > { %v1855_v8 = vsel %vm1730_vm8, %v3684_v35, %v1852_v15 }
 0x3a0   : > { %v1857_v20 = vmul.f32 %v1855_v8, %v1855_v8 }
 0x3a2   : > { %v1858_v29 = vmul.f32 -0.001358992, %v1857_v20  ;;  %v1865_v27 = vmul.f32 -0.00019511016, %v1857_v20 }
 0x3a4   : > { %v1859_v32 = vadd.f32 0.041655596, %v1858_v29  ;;  %v1866_v38 = vadd.f32 0.008332121, %v1865_v27 }
 0x3a6   : > { %v1860_v39 = vmul.f32 %v1859_v32, %v1857_v20  ;;  %v1867_v50 = vmul.f32 %v1866_v38, %v1857_v20 }
 0x3a8   : > { %v1861_v17 = vadd.f32 -0.4999988, %v1860_v39  ;;  %v1868_v54 = vadd.f32 -0.16666654, %v1867_v50 }
 0x3aa   : > { %v1862_v19 = vmul.f32 %v1861_v17, %v1857_v20  ;;  %v1869_v55 = vmul.f32 %v1868_v54, %v1857_v20 }
 0x3ac   : > { %v1863_v49 = vadd.f32 1.0, %v1862_v19  ;;  %v1870_v45 = vadd.f32 1.0, %v1869_v55 }
 0x3ae   : > { %v1871_v40 = vmul.f32 %v1870_v45, %v1855_v8  ;;  %v1880_v63 = vxor.u32 2147483648, %v1863_v49 }
 0x3b0   : > { %v1877_v0 = vxor.u32 2147483648, %v1871_v40  ;;  %v1881_v10 = vsel %vm1879_vm10, %v1880_v63, %v1871_v40 }
 0x3b2   : > { %v1878_v1 = vsel %vm1876_vm9, %v1863_v49, %v1877_v0 }
 0x3b3   : > { %v1882_v56 = vsel %vm1875_vm11, %v1878_v1, %v1881_v10 }
 0x3b4   : > { %v1883_v2 = vsel %vm1872_vm12, nan, %v1882_v56 }
 0x3b5   : > { %1917 = vmatmul.f32.vlgmr.msra.gmra.mxu2 %v1883_v2 }
 0x438   : > { %v1918_v53 = vpop.f32.mrf.mxu2 }
 0x439   : > { %v1919_v33 = vadd.f32 %v1918_v53, %v1900_v46 }
 0x43b   : > { %2553 = vtanh.f32 %v1919_v33 }
 0x441   : > { %v3762_v34 = vpop.eup %2553 }
 0x442   : > { %v3766_v35 = vmul.f32 %v3762_v34, %v3762_v34  ;;  %v1922_v59 = vmul.f32 9990.0, %v3762_v34 }
 0x444   : > { %2095 = vrot.lane.b32.xlu1 %v3766_v35, %s2967_s23  ;;  %v1923_v31 = vadd.f32 10010.0, %v1922_v59  ;;  %2131 = vst.msk [vmem:[#allocation20] sm:$0x1] %vm2130_vm13, %v3766_v35 }
 0x446   : > { %v1926_v5 = vmul.f32 6.2831855, %v1923_v31 }
 0x448   : > { %v3772_v14 = vmul.f32 %v1933_v37, %v1926_v5 }
 0x44a   : > { %v1938_v7 = vand.u32 2139095040, %v3772_v14  ;;  %v1935_v21 = vand.u32 2147483647, %v3772_v14  ;;  %vm1937_vm11 = vcmp.lt.s32.totalorder %v3772_v14, 0 }
 0x44c   : > { %2121 = vrot.lane.b32.xlu1 %v3766_v35, %s2968_s7  ;;  %v1939_v42 = vshrl.u32 %v1938_v7, 23  ;;  %v1942_v6 = vand.u32 8388607, %v1935_v21  ;;  %vm3833_vm12 = vcmp.le.f32.partialorder %v1935_v21, 0.7853982 }
 0x44e   : > { %v2393_v43 = vadd.s32 4294967169, %v1939_v42  ;;  %v1943_v18 = vor.u32 8388608, %v1942_v6 }
 0x450   : > { %v1945_v9 = vadd.s32 1, %v2393_v43 }
 0x452   : > { %vm1946_vm15 = vcmp.gt.s32.totalorder %v1945_v9, 0 }
 0x453   : > { %v1947_v60 = vsel %vm1946_vm15, %v1945_v9, 0 }
 0x454   : > { %v1949_v41 = vand.u32 31, %v1947_v60  ;;  %v3780_v47 = vshrl.u32 %v1947_v60, 5 }
 0x456   : > { %v1950_v62 = vsub.s32 32, %v1949_v41  ;;  %v1952_v52 = vshll.u32 %v2959_v22, %v1949_v41  ;;  %v1955_v25 = vshll.u32 %v2960_v24, %v1949_v41  ;;  %v1958_v16 = vshll.u32 %v2961_v26, %v1949_v41 }
 0x457   : > { %v1961_v20 = vshll.u32 %v2962_v28, %v1949_v41  ;;  %v1964_v27 = vshll.u32 %v2963_v30, %v1949_v41  ;;  %vm1967_vm0 = vcmp.lt.s32.totalorder %v3780_v47, 1  ;;  %vm1970_vm1 = vcmp.lt.s32.totalorder %v3780_v47, 4 }
 0x458   : > { %v1953_v13 = vshrl.u32 %v2960_v24, %v1950_v62  ;;  %v1956_v15 = vshrl.u32 %v2961_v26, %v1950_v62  ;;  %v1959_v8 = vshrl.u32 %v2962_v28, %v1950_v62  ;;  %v1962_v29 = vshrl.u32 %v2963_v30, %v1950_v62 }
 0x459   : > { %v1965_v23 = vshrl.u32 %v2964_v36, %v1950_v62  ;;  %v3793_v24 = vshll.u32 %v1943_v18, 8  ;;  %vm1969_vm2 = vcmp.lt.s32.totalorder %v3780_v47, 3  ;;  %vm1968_vm3 = vcmp.lt.s32.totalorder %v3780_v47, 2 }
 0x45a   : > { %v1954_v32 = vor.u32 %v1953_v13, %v1952_v52  ;;  %v1957_v38 = vor.u32 %v1956_v15, %v1955_v25  ;;  %v1960_v44 = vor.u32 %v1959_v8, %v1958_v16  ;;  %v1963_v39 = vor.u32 %v1962_v29, %v1961_v20 }
 0x45b   : > { %v1966_v50 = vor.u32 %v1965_v23, %v1964_v27  ;;  %v1984_v55 = vand.u32 65535, %v3793_v24  ;;  %v1985_v49 = vshrl.u32 %v3793_v24, 16  ;;  %v1951_v43 = vshrl.u32 %v2959_v22, %v1950_v62 }
 0x45c   : > { %v1975_v26 = vsel %vm1967_vm0, %v1954_v32, %v1957_v38  ;;  %v1979_v28 = vsel %vm1967_vm0, %v1957_v38, %v1960_v44  ;;  %v1976_v30 = vsel %vm1970_vm1, %v1963_v39, 920167782  ;;  %v1972_v5 = vsel %vm1970_vm1, %v1960_v44, 2102212464 }
 0x45d   : > { %v1980_v36 = vsel %vm1970_vm1, %v1966_v50, 1326507024  ;;  %v1977_v17 = vsel %vm1969_vm2, %v1960_v44, %v1976_v30  ;;  %v1971_v52 = vsel %vm1967_vm0, %v1951_v43, %v1954_v32  ;;  %v1973_v25 = vsel %vm1969_vm2, %v1957_v38, %v1972_v5 }
 0x45e   : > { %v1981_v54 = vsel %vm1969_vm2, %v1963_v39, %v1980_v36  ;;  %v1978_v48 = vsel %vm1968_vm3, %v1975_v26, %v1977_v17  ;;  %v1974_v22 = vsel %vm1968_vm3, %v1971_v52, %v1973_v25  ;;  %vm2078_vm0 = vweird.f32 %v3772_v14 }
 0x45f   : > { %v1982_v19 = vsel %vm1968_vm3, %v1979_v28, %v1981_v54  ;;  %v2008_v40 = vand.u32 65535, %v1978_v48  ;;  %v2009_v63 = vshrl.u32 %v1978_v48, 16  ;;  %v2028_v27 = vmul.u32 %v3793_v24, %v1974_v22 }
 0x460   : > { %v1986_v45 = vand.u32 65535, %v1982_v19  ;;  %v1987_v57 = vshrl.u32 %v1982_v19, 16 }
 0x461   : > { %v2011_v10 = vmul.u32 %v2009_v63, %v1984_v55  ;;  %v2012_v56 = vmul.u32 %v2008_v40, %v1985_v49  ;;  %v2010_v51 = vmul.u32 %v2008_v40, %v1984_v55  ;;  %v2013_v58 = vmul.u32 %v2009_v63, %v1985_v49 }
 0x462   : > { %v1989_v0 = vmul.u32 %v1987_v57, %v1984_v55  ;;  %v1990_v1 = vmul.u32 %v1986_v45, %v1985_v49  ;;  %v1988_v2 = vmul.u32 %v1986_v45, %v1984_v55  ;;  %v1991_v11 = vmul.u32 %v1987_v57, %v1985_v49 }
 0x463   : > { %v2014_v46 = vshll.u32 %v2011_v10, 16  ;;  %v2016_v4 = vshll.u32 %v2012_v56, 16  ;;  %v2015_v41 = vshrl.u32 %v2011_v10, 16  ;;  %v2017_v16 = vshrl.u32 %v2012_v56, 16 }
 0x464   : > { %v1992_v61 = vshll.u32 %v1989_v0, 16  ;;  %v1994_v53 = vshll.u32 %v1990_v1, 16  ;;  %v1993_v9 = vshrl.u32 %v1989_v0, 16  ;;  %v1995_v13 = vshrl.u32 %v1990_v1, 16 }
 0x465   : > { %vm2018_vm5 = vc.u32 %v2010_v51, %v2014_v46  ;;  %v2020_v59 = vadd.s32 %v2014_v46, %v2010_v51 }
 0x466   : > { %vm1996_vm4 = vc.u32 %v1988_v2, %v1992_v61  ;;  %v1998_v33 = vadd.s32 %v1992_v61, %v1988_v2  ;;  %v2019_v37 = vsel %vm2018_vm5, 1, %v2965_v12  ;;  %vm2138_vm5 = vcmask 16400  }
 0x467   : > { %v1997_v3 = vsel %vm1996_vm4, 1, %v2965_v12  ;;  %v2021_v42 = vadd.s32 %v2019_v37, %v2013_v58  ;;  %vm2022_vm7 = vc.u32 %v2020_v59, %v2016_v4  ;;  %v2024_v29 = vadd.s32 %v2020_v59, %v2016_v4 }
 0x468   : > { %v1999_v31 = vadd.s32 %v1997_v3, %v1991_v11  ;;  %vm2000_vm6 = vc.u32 %v1998_v33, %v1994_v53  ;;  %v2023_v60 = vsel %vm2022_vm7, 1, %v2965_v12  ;;  %vm2136_vm4 = vcmask 8200  }
 0x469   : > { %v2001_v7 = vsel %vm2000_vm6, 1, %v2965_v12  ;;  %v2025_v18 = vadd.s32 %v2023_v60, %v2021_v42  ;;  %vm2148_vm7 = vcmask 24600  }
 0x46a   : > { %v2003_v6 = vadd.s32 %v2001_v7, %v1999_v31 }
 0x46b   : > { %v2026_v8 = vadd.s32 %v2025_v18, %v2015_v41 }
 0x46c   : > { %v2004_v15 = vadd.s32 %v2003_v6, %v1993_v9 }
 0x46d   : > { %v2027_v62 = vadd.s32 %v2026_v8, %v2017_v16 }
 0x46e   : > { %v2005_v20 = vadd.s32 %v2004_v15, %v1995_v13  ;;  %v1925_v13 = vmul.f32 -2.0, %v3762_v34 }
 0x46f   : > { %v2031_v12 = vadd.s32 1, %v2027_v62 }
 0x470   : > { %vm2030_vm8 = vc.u32 %v2005_v20, %v2024_v29  ;;  %v2029_v47 = vadd.s32 %v2024_v29, %v2005_v20  ;;  %v2140_v20 = vmul.f32 2.0, %v3762_v34 }
 0x471   : > { %v2032_v23 = vsel %vm2030_vm8, %v2031_v12, %v2027_v62  ;;  %vm2158_vm8 = vcmask 32800  }
 0x472   : > { %v2033_v44 = vadd.s32 %v2032_v23, %v2028_v27 }
 0x474   : > { %v2034_v32 = vadd.s32 536870912, %v2033_v44 }
 0x476   : > { %v2035_v39 = vshrl.u32 %v2034_v32, 30 }
 0x478   : > { %v2036_v50 = vshll.u32 %v2035_v39, 30  ;;  %v2059_v46 = vsub.s32 4, %v2035_v39 }
 0x47a   : > { %v2037_v38 = vsub.s32 %v2033_v44, %v2036_v50  ;;  %v2060_v4 = vsel %vm1937_vm11, %v2059_v46, %v2035_v39 }
 0x47b   : > { %v2062_v21 = vsel %vm3833_vm12, 0, %v2060_v4 }
 0x47c   : > { %vm2038_vm9 = vcmp.lt.s32.totalorder %v2037_v38, 0  ;;  %v2039_v26 = vsub.s32 0, %v2037_v38  ;;  %v2079_v43 = vand.u32 3, %v2062_v21 }
 0x47e   : > { %v2040_v28 = vsel %vm2038_vm9, %v2039_v26, %v2037_v38  ;;  %vm2081_vm13 = vcmp.eq.s32.totalorder %v2079_v43, 0  ;;  %vm2084_vm14 = vcmp.eq.s32.totalorder %v2079_v43, 2  ;;  %vm2080_vm15 = vcmp.lt.s32.totalorder %v2079_v43, 2 }
 0x47f   : > { %v2041_v30 = vclz %v2040_v28  ;;  %v2168_v26 = vsub.f32 1.0, %v3766_v35  ;;  %vm2166_vm9 = vcmask 41000  }
 0x481   : > { %v2394_v36 = vadd.s32 4294967294, %v2041_v30 }
 0x483   : > { %vm2395_vm10 = vcmp.lt.s32.totalorder %v2394_v36, 0 }
 0x484   : > { %v2044_v17 = vsel %vm2395_vm10, 0, %v2394_v36  ;;  %vm2173_vm10 = vcmask 49200  }
 0x485   : > { %v2045_v54 = vsub.s32 32, %v2044_v17  ;;  %v2049_v48 = vsub.s32 4294967266, %v2044_v17  ;;  %v2046_v19 = vshll.u32 %v2037_v38, %v2044_v17 }
 0x487   : > { %v2047_v55 = vshrl.u32 %v2029_v47, %v2045_v54  ;;  %v2050_v49 = vadd.s32 127, %v2049_v48  ;;  %v2160_v47 = vmul.f32 %v3762_v34, %v3766_v35 }
 0x489   : > { %v2048_v24 = vor.u32 %v2047_v55, %v2046_v19  ;;  %v2051_v45 = vshll.u32 %v2050_v49, 23  ;;  %v2161_v54 = vsub.f32 0.0, %v2160_v47 }
 0x48b   : > { %v2052_v57 = vor.u32 4788187, %v2051_v45  ;;  %v2055_v63 = vcvt.s32.f32 %v2048_v24 }
 0x48d   : > { %v2053_v40 = vand.u32 2147483647, %v2052_v57 }
 0x48f   : > { %v2056_v0 = vmul.f32 %v2055_v63, %v2053_v40 }
 0x491   : > { %v2057_v1 = vxor.u32 2147483648, %v2056_v0 }
 0x493   : > { %v2058_v56 = vsel %vm1937_vm11, %v2057_v1, %v2056_v0  ;;  %vm2179_vm11 = vcmask 57400  }
 0x494   : > { %v2061_v2 = vsel %vm3833_vm12, %v3772_v14, %v2058_v56 }
 0x495   : > { %v2063_v61 = vmul.f32 %v2061_v2, %v2061_v2 }
 0x497   : > { %v2064_v11 = vmul.f32 -0.001358992, %v2063_v61  ;;  %v2071_v51 = vmul.f32 -0.00019511016, %v2063_v61 }
 0x499   : > { %v2065_v53 = vadd.f32 0.041655596, %v2064_v11  ;;  %v2072_v33 = vadd.f32 0.008332121, %v2071_v51 }
 0x49b   : > { %v2066_v58 = vmul.f32 %v2065_v53, %v2063_v61  ;;  %v2073_v3 = vmul.f32 %v2072_v33, %v2063_v61 }
 0x49d   : > { %v2067_v59 = vadd.f32 -0.4999988, %v2066_v58  ;;  %v2074_v31 = vadd.f32 -0.16666654, %v2073_v3 }
 0x49f   : > { %v2068_v37 = vmul.f32 %v2067_v59, %v2063_v61  ;;  %v2075_v5 = vmul.f32 %v2074_v31, %v2063_v61 }
 0x4a1   : > { %v2069_v7 = vadd.f32 1.0, %v2068_v37  ;;  %v2076_v42 = vadd.f32 1.0, %v2075_v5 }
 0x4a3   : > { %v2077_v9 = vmul.f32 %v2076_v42, %v2061_v2  ;;  %v2085_v6 = vxor.u32 2147483648, %v2069_v7 }
 0x4a5   : > { %v2082_v60 = vxor.u32 2147483648, %v2077_v9  ;;  %v2086_v18 = vsel %vm2084_vm14, %v2085_v6, %v2077_v9 }
 0x4a7   : > { %v2083_v41 = vsel %vm2081_vm13, %v2069_v7, %v2082_v60 }
 0x4a8   : > { %v2087_v52 = vsel %vm2080_vm15, %v2083_v41, %v2086_v18 }
 0x4a9   : > { %v2088_v25 = vsel %vm2078_vm0, nan, %v2087_v52 }
 0x4aa   : > { %2090 = vrot.lane.b32.xlu0 %v2088_v25, %s2969_s18 }
 0x4b6   : > { %v2096_v8 = vpop.permute.xlu1 %2095 }
 0x4b7   : > { %v2098_v29 = vmul.f32 %v2096_v8, %v3766_v35  ;;  %v2150_v22 = vmul.f32 %v2140_v20, %v2096_v8  ;;  %v2142_v62 = vmul.f32 %v3762_v34, %v2096_v8 }
 0x4b9   : > { %v2099_v14 = vadd.f32 1.0, %v2098_v29 }
 0x4be   : > { %v2122_v28 = vpop.permute.xlu1 %2121 }
 0x4bf   : > { %v2124_v30 = vadd.f32 %v2122_v28, %v3766_v35 }
 0x51c   : > { %v2091_v15 = vpop.permute.xlu0 %2090 }
 0x51d   : > { %v2093_v16 = vmul.f32 %v2091_v15, %v1925_v13 }
 0x51f   : > { %2101 = vrot.lane.b32.xlu0 %v2093_v16, %s2967_s23 }
 0x591   : > { %v2102_v12 = vpop.permute.xlu0 %2101 }
 0x592   : > { %v2141_v27 = vadd.f32 %v2140_v20, %v2102_v12  ;;  %v2151_v23 = vadd.f32 %v2150_v22, %v2102_v12  ;;  %v2104_v44 = vmul.f32 %v3762_v34, %v2102_v12 }
 0x594   : > { %2126 = vrot.lane.b32.xlu2 %v2104_v44, %s2968_s7  ;;  %v2105_v32 = vadd.f32 %v2104_v44, %v2099_v14  ;;  %v2143_v39 = vadd.f32 %v2142_v62, %v2141_v27  ;;  %v2152_v50 = vadd.f32 %v3762_v34, %v2151_v23 }
 0x596   : > { %2145 = vrot.lane.b32.xlu0 %v2143_v39, %s2970_s6  ;;  %v2153_v38 = vsub.f32 0.0, %v2152_v50  ;;  %2555 = vrcp.f32 %v2105_v32  ;;  %v2117_v45 = vand.u32 2147483648, %v2105_v32  ;;  %vm2111_vm2 = vweird.f32 %v2105_v32 }
 0x597   : > { %v2115_v57 = vand.u32 2147483647, %v2105_v32 }
 0x598   : > { %2155 = vrot.lane.b32.xlu1 %v2153_v38, %s2967_s23  ;;  %v2118_v0 = vor.u32 1.1754944e-38, %v2117_v45 }
 0x599   : > { %vm2116_vm6 = vcmp.eq.f32.partialorder %v2115_v57, 8.507059e+37 }
 0x59c   : > { %v2556_v48 = vpop.eup %2555 }
 0x59d   : > { %v2107_v19 = vmul.f32 %v2556_v48, %v2105_v32  ;;  %vm2112_vm1 = vweird.f32 %v2556_v48 }
 0x59e   : > { %2170 = vrot.lane.b32.xlu0 %v2168_v26, %s2971_s16  ;;  %vm2113_vm3 = vmor %vm2111_vm2, %vm2112_vm1 }
 0x59f   : > { %v2108_v55 = vsub.f32 1.0, %v2107_v19 }
 0x5a0   : > { %2176 = vrot.lane.b32.xlu1 %v3762_v34, %s2972_s26 }
 0x5a1   : > { %v2109_v49 = vmul.f32 %v2556_v48, %v2108_v55 }
 0x5a3   : > { %v2110_v24 = vadd.f32 %v2556_v48, %v2109_v49 }
 0x5a5   : > { %v2114_v40 = vsel %vm2113_vm3, %v2556_v48, %v2110_v24 }
 0x5a6   : > { %v2119_v1 = vsel %vm2116_vm6, %v2118_v0, %v2114_v40 }
 0x5ee   : > { %v2127_v36 = vpop.permute.xlu2 %2126 }
 0x5ef   : > { %v2129_v17 = vadd.f32 %v2127_v36, %v2124_v30 }
 0x5f1   : > { %2133 = vrot.lane.b32.xlu2 %v2129_v17, %s2970_s6 }
 0x5f9   : > { %2163 = vrot.lane.b32.xlu2 %v2161_v54, %s2973_s1 }
 0x608   : > { %v2146_v63 = vpop.permute.xlu0 %2145 }
 0x60a   : > { %v2156_v34 = vpop.permute.xlu1 %2155 }
 0x610   : > { %v2171_v56 = vpop.permute.xlu0 %2170 }
 0x612   : > { %v2177_v2 = vpop.permute.xlu1 %2176 }
 0x64b   : > { %v2134_v35 = vpop.permute.xlu2 %2133 }
 0x64c   : > { %2137 = vst.msk [vmem:[#allocation20] sm:$0x1] %vm2136_vm4, %v2134_v35 }
 0x64d   : > { %2139 = vst.msk [vmem:[#allocation20] sm:$0x1] %vm2138_vm5, %v2119_v1 }
 0x64e   : > { %2149 = vst.msk [vmem:[#allocation20] sm:$0x1] %vm2148_vm7, %v2146_v63 }
 0x64f   : > { %2159 = vst.msk [vmem:[#allocation20] sm:$0x1] %vm2158_vm8, %v2156_v34 }
 0x653   : > { %v2164_v10 = vpop.permute.xlu2 %2163 }
 0x654   : > { %2167 = vst.msk [vmem:[#allocation20] sm:$0x1] %vm2166_vm9, %v2164_v10 }
 0x655   : > { %2174 = vst.msk [vmem:[#allocation20] sm:$0x1] %vm2173_vm10, %v2171_v56 }
 0x656   : > { %2180 = vst.msk [vmem:[#allocation20] sm:$0x1] %vm2179_vm11, %v2177_v2 }
 0x657 PF: > { %p2487_p3 = scmp.eq.s32.totalorder %s3054_s20, 3  ;;  %s2974_s19 = smov [#allocation20]  }
 0x658   : > { %s2187_s29 = sshll.u32 %s2974_s19, 4  ;;  %s2189_s24 = sshll.u32 %s3884_s10, 4  ;;  %s2188_s29 = int_to_ptr.vmem [resolvable:$true] %s2187_s29  ;;  %s2190_s24 = int_to_ptr.hbm [resolvable:$true] %s2189_s24 }
 0x659   : > { %2437 = dma.vmem_to_hbm [thread:$0]  (%p2487_p3), %s2188_s29, 16, %s2190_s24, [#allocation5]  }
 0x65a   : > { %2926 = dma.done.wait (%p2487_p3), [#allocation5], 16  }
 0x65b   : > { %2928 = vsyncadd (%p2487_p3), [#allocation5], 4294967280 }
 0x65c PF: > { %s3921_s16 = sld [smem:[#allocation29_spill]]  ;;  %s3924_s13 = smov %s2935_s14 }
 0x65d   : > { %s3922_s25 = sld [smem:[#allocation28_spill]] }
 0x65e   : > { %s3923_s15 = sld [smem:[#allocation30_spill]] }
 0x662   : > { %p28_p4 = scmp.ge.s32.totalorder %s3921_s16, 6  }
 0x663   : > { %s3925_s14 = smov %s3922_s25 }
 0x664   :  { %30 = sbr.rel (!%p28_p4) target bundleno = 18 (0x12), region = 157 }
 0x669   :  { %2203 = vsyncpa [#allocation4], 1 }
 0x66a   :  { %2205 = vsyncpa [#allocation4 + $0x1], 1 }
 0x66b   :  { %2206 = vsyncpa [#allocation7], 1 }
 0x66c   :  { %2208 = vsyncpa [#allocation7 + $0x1], 1 }
 0x66d   :  { %2209 = vsyncpa [#allocation10], 1 }
 0x66e   :  { %2210 = vsyncpa [#allocation13], 1 }
 0x66f   :  { %2211 = vsyncpa [#allocation16], 1 }
 0x670   :  { %2212 = vsyncpa [#allocation19], 1 }
 0x671   :  { %2213 = vsyncpa [#allocation5], 1 }
 0x672   :  { %2215 = vsyncpa [#allocation5 + $0x1], 1 }

</bundles_post_ra>
